<compile_context>
chip_gen: v7x
topology: tpu7x:2x2x1
jax: 0.10.0
libtpu: 0.0.40
codegen_flags: <defaults>
</compile_context>

<pallas_src>
import functools

import jax
import jax.numpy as jnp
from jax import lax
from jax.experimental import pallas as pl
from jax.experimental.pallas import tpu as pltpu

LANE = 128          # pad every feature axis to the vreg lane width
N_ODE_STEPS = 4     # fixed RK4 sub-steps per observation interval


def ode_rnn_kernel(t_ref, x_ref,
                   w_in_ref, b_in_ref,
                   w_h_ref, b_h_ref,
                   w1_ref, b1_ref,
                   w2_ref, b2_ref,
                   w_dec_ref, b_dec_ref,
                   out_ref):
    """Fused ODE-RNN forward over the full sequence (single invocation)."""
    seq_len = x_ref.shape[0]
    f32 = jnp.float32

    def ode_f(h):
        # ode_func(t, h) = linear2(tanh(linear1(h)))   (t unused, as in the spec)
        z = jnp.tanh(
            jnp.dot(h, w1_ref[...], preferred_element_type=f32) + b1_ref[...])
        return jnp.dot(z, w2_ref[...], preferred_element_type=f32) + b2_ref[...]

    inv_steps = f32(1.0 / N_ODE_STEPS)

    def time_step(i, h):
        # --- integrate dh/dt = ode_f(h) from t[i-1] to t[i] (fixed-step RK4) ---
        dt = (t_ref[i] - t_ref[i - 1]) * inv_steps

        def rk4(_, hh):
            k1 = ode_f(hh)
            k2 = ode_f(hh + (0.5 * dt) * k1)
            k3 = ode_f(hh + (0.5 * dt) * k2)
            k4 = ode_f(hh + dt * k3)
            return hh + (dt * (1.0 / 6.0)) * (k1 + 2.0 * k2 + 2.0 * k3 + k4)

        h_ip = lax.fori_loop(0, N_ODE_STEPS, rk4, h, unroll=True)

        # --- RNN update: h = tanh(linear_in(x_i) + linear_hidden(h_ip)) ---
        x_i = x_ref[pl.ds(i, 1), :]                         # (1, LANE)
        pre = (jnp.dot(x_i, w_in_ref[...], preferred_element_type=f32)
               + b_in_ref[...]
               + jnp.dot(h_ip, w_h_ref[...], preferred_element_type=f32)
               + b_h_ref[...])
        return jnp.tanh(pre)

    # h starts at zero; i = 0 is skipped (matches the PyTorch `if i > 0:`).
    h0 = jnp.zeros((1, b_h_ref.shape[1]), f32)
    h_final = lax.fori_loop(1, seq_len, time_step, h0)

    out = (jnp.dot(h_final, w_dec_ref[...], preferred_element_type=f32)
           + b_dec_ref[...])
    out_ref[...] = out.astype(out_ref.dtype)


# ----------------------------- parameter prep -------------------------------

def _pad_weight_t(w, in_pad, out_pad):
    """PyTorch (out, in) weight -> transposed (in, out), zero-padded."""
    wt = jnp.asarray(w, jnp.float32).T
    return (jnp.zeros((in_pad, out_pad), jnp.float32)
            .at[:wt.shape[0], :wt.shape[1]].set(wt))


def _pad_bias(b, out_pad):
    b = jnp.asarray(b, jnp.float32)
    return jnp.zeros((1, out_pad), jnp.float32).at[0, :b.shape[0]].set(b)


def prepare_params(w_in, b_in, w_h, b_h, w1, b1, w2, b2, w_dec, b_dec,
                   lane=LANE):
    """One-time prep: transpose weights to (in, out) and zero-pad to lane width."""
    return dict(
        w_in=_pad_weight_t(w_in, lane, lane),   b_in=_pad_bias(b_in, lane),
        w_h=_pad_weight_t(w_h, lane, lane),     b_h=_pad_bias(b_h, lane),
        w1=_pad_weight_t(w1, lane, lane),       b1=_pad_bias(b1, lane),
        w2=_pad_weight_t(w2, lane, lane),       b2=_pad_bias(b2, lane),
        w_dec=_pad_weight_t(w_dec, lane, lane), b_dec=_pad_bias(b_dec, lane),
    )


# --------------------------------- wrapper -----------------------------------

@functools.partial(jax.jit, static_argnames=("output_size",))
def ode_rnn_forward(t, x, params, *, output_size):
    """JAX wrapper mirroring ODE_RNN.forward(t, x).

    Args:
      t: (T,) observation times.
      x: (T, input_size) observation sequence.
      params: dict from prepare_params() (pre-transposed, lane-padded).
      output_size: decoder output dimension.
    Returns:
      (output_size, 1) float32 output (column vector, as in the PyTorch module).
    """
    t = jnp.asarray(t, jnp.float32).reshape(-1)
    seq_len, input_size = x.shape
    x_pad = (jnp.zeros((seq_len, LANE), jnp.float32)
             .at[:, :input_size].set(x.astype(jnp.float32)))

    smem = pl.BlockSpec(memory_space=pltpu.MemorySpace.SMEM)
    vmem = pl.BlockSpec(memory_space=pltpu.MemorySpace.VMEM)

    out_pad = pl.pallas_call(
        ode_rnn_kernel,
        out_shape=jax.ShapeDtypeStruct((1, LANE), jnp.float32),
        in_specs=[smem] + [vmem] * 11,
        out_specs=vmem,
    )(t, x_pad,
      params["w_in"], params["b_in"],
      params["w_h"], params["b_h"],
      params["w1"], params["b1"],
      params["w2"], params["b2"],
      params["w_dec"], params["b_dec"])

    # decoder(h) applied to a column vector in PyTorch -> (output_size, 1)
    return out_pad[0, :output_size].reshape(output_size, 1)


# ------------------------------ pure-JAX reference ---------------------------

def reference_forward(t, x, raw, n_ode_steps=N_ODE_STEPS):
    """Unpadded pure-JAX reference of the same math (fixed-step RK4)."""
    (w_in, b_in, w_h, b_h, w1, b1, w2, b2, w_dec, b_dec) = raw
    dot = functools.partial(jnp.dot, precision=lax.Precision.HIGHEST)
    hidden = b_h.shape[0]
    h = jnp.zeros((hidden,), jnp.float32)

    def f(hh):
        return dot(jnp.tanh(dot(hh, w1.T) + b1), w2.T) + b2

    seq_len = t.shape[0]
    for i in range(1, seq_len):
        dt = (t[i] - t[i - 1]) / n_ode_steps
        hh = h
        for _ in range(n_ode_steps):
            k1 = f(hh)
            k2 = f(hh + 0.5 * dt * k1)
            k3 = f(hh + 0.5 * dt * k2)
            k4 = f(hh + dt * k3)
            hh = hh + (dt / 6.0) * (k1 + 2.0 * k2 + 2.0 * k3 + k4)
        h = jnp.tanh(dot(x[i], w_in.T) + b_in + dot(hh, w_h.T) + b_h)
    return (dot(h, w_dec.T) + b_dec).reshape(-1, 1)


# ----------------------------------- main ------------------------------------

if __name__ == "__main__":
    key = jax.random.PRNGKey(0)
    seq_len, input_size, hidden, output_size = 8, 4, 32, 4

    keys = jax.random.split(key, 11)

    def lin(kw, kb, out_f, in_f):
        bound = 1.0 / jnp.sqrt(in_f)
        w = jax.random.uniform(kw, (out_f, in_f), jnp.float32, -bound, bound)
        b = jax.random.uniform(kb, (out_f,), jnp.float32, -bound, bound)
        return w, b

    w_in, b_in = lin(keys[0], keys[1], hidden, input_size)
    w_h, b_h = lin(keys[2], keys[3], hidden, hidden)
    w1, b1 = lin(keys[4], keys[5], hidden, hidden)
    w2, b2 = lin(keys[6], keys[7], hidden, hidden)
    w_dec, b_dec = lin(keys[8], keys[9], output_size, hidden)

    x = jax.random.normal(keys[10], (seq_len, input_size), dtype=jnp.float32)
    t = jnp.linspace(0.0, 1.0, seq_len, dtype=jnp.float32)

    params = prepare_params(w_in, b_in, w_h, b_h, w1, b1, w2, b2, w_dec, b_dec)

    out = ode_rnn_forward(t, x, params, output_size=output_size)
    out = jax.block_until_ready(out)

    ref = reference_forward(
        t, x, (w_in, b_in, w_h, b_h, w1, b1, w2, b2, w_dec, b_dec))

    assert out.shape == (output_size, 1)
    assert jnp.allclose(out, ref, atol=5e-4, rtol=5e-4), (out, ref)

    print("KERNEL_OK")
</pallas_src>

<mosaic_0001>
module attributes {stable_mosaic.version = 11 : i64} {
  func.func @ode_rnn_kernel(%arg0: memref<8xf32, #tpu.memory_space<smem>>, %arg1: memref<8x128xf32, #tpu.memory_space<vmem>>, %arg2: memref<128x128xf32, #tpu.memory_space<vmem>>, %arg3: memref<1x128xf32, #tpu.memory_space<vmem>>, %arg4: memref<128x128xf32, #tpu.memory_space<vmem>>, %arg5: memref<1x128xf32, #tpu.memory_space<vmem>>, %arg6: memref<128x128xf32, #tpu.memory_space<vmem>>, %arg7: memref<1x128xf32, #tpu.memory_space<vmem>>, %arg8: memref<128x128xf32, #tpu.memory_space<vmem>>, %arg9: memref<1x128xf32, #tpu.memory_space<vmem>>, %arg10: memref<128x128xf32, #tpu.memory_space<vmem>>, %arg11: memref<1x128xf32, #tpu.memory_space<vmem>>, %arg12: memref<1x128xf32, #tpu.memory_space<vmem>>) attributes {dimension_semantics = [], scalar_prefetch = 0 : i64, scratch_operands = 0 : i64, tpu.core_type = #tpu.core_type<tc>} {
    %cst = arith.constant 0.000000e+00 : f32
    %0 = vector.broadcast %cst : f32 to vector<1x128xf32>
    %cst_0 = arith.constant 2.500000e-01 : f32
    %c1_i32 = arith.constant 1 : i32
    %c7_i32 = arith.constant 7 : i32
    %1 = arith.addi %c1_i32, %c7_i32 : i32
    %c1_i32_1 = arith.constant 1 : i32
    %2 = scf.for %arg13 = %c1_i32 to %1 step %c1_i32_1 iter_args(%arg14 = %0) -> (vector<1x128xf32>)  : i32 {
      %8 = arith.index_cast %arg13 : i32 to index
      %9 = memref.load %arg0[%8] : memref<8xf32, #tpu.memory_space<smem>>
      %c1_i32_9 = arith.constant 1 : i32
      %10 = arith.subi %arg13, %c1_i32_9 : i32
      %11 = arith.index_cast %10 : i32 to index
      %12 = memref.load %arg0[%11] : memref<8xf32, #tpu.memory_space<smem>>
      %13 = arith.subf %9, %12 : f32
      %14 = arith.mulf %13, %cst_0 : f32
      %c0_i32 = arith.constant 0 : i32
      %c0_10 = arith.constant 0 : index
      %c0_11 = arith.constant 0 : index
      %15 = vector.load %arg6[%c0_10, %c0_11] : memref<128x128xf32, #tpu.memory_space<vmem>>, vector<128x128xf32>
      %cst_12 = arith.constant dense<0.000000e+00> : vector<1x128xf32>
      %16 = tpu.matmul %arg14, %15, %cst_12 {dimension_numbers = #tpu.dot_dimension_numbers<[1], [0], [0], [1], [0, 0, 1, 1], [], []>} : vector<1x128xf32>, vector<128x128xf32>, vector<1x128xf32> -> vector<1x128xf32>
      %c0_13 = arith.constant 0 : index
      %c0_14 = arith.constant 0 : index
      %17 = vector.load %arg7[%c0_13, %c0_14] : memref<1x128xf32, #tpu.memory_space<vmem>>, vector<1x128xf32>
      %18 = arith.addf %16, %17 : vector<1x128xf32>
      %19 = math.tanh %18 : vector<1x128xf32>
      %c0_15 = arith.constant 0 : index
      %c0_16 = arith.constant 0 : index
      %20 = vector.load %arg8[%c0_15, %c0_16] : memref<128x128xf32, #tpu.memory_space<vmem>>, vector<128x128xf32>
      %cst_17 = arith.constant dense<0.000000e+00> : vector<1x128xf32>
      %21 = tpu.matmul %19, %20, %cst_17 {dimension_numbers = #tpu.dot_dimension_numbers<[1], [0], [0], [1], [0, 0, 1, 1], [], []>} : vector<1x128xf32>, vector<128x128xf32>, vector<1x128xf32> -> vector<1x128xf32>
      %c0_18 = arith.constant 0 : index
      %c0_19 = arith.constant 0 : index
      %22 = vector.load %arg9[%c0_18, %c0_19] : memref<1x128xf32, #tpu.memory_space<vmem>>, vector<1x128xf32>
      %23 = arith.addf %21, %22 : vector<1x128xf32>
      %cst_20 = arith.constant 5.000000e-01 : f32
      %24 = arith.mulf %cst_20, %14 : f32
      %25 = vector.broadcast %24 : f32 to vector<1x128xf32>
      %26 = arith.mulf %25, %23 : vector<1x128xf32>
      %27 = arith.addf %arg14, %26 : vector<1x128xf32>
      %c0_21 = arith.constant 0 : index
      %c0_22 = arith.constant 0 : index
      %28 = vector.load %arg6[%c0_21, %c0_22] : memref<128x128xf32, #tpu.memory_space<vmem>>, vector<128x128xf32>
      %cst_23 = arith.constant dense<0.000000e+00> : vector<1x128xf32>
      %29 = tpu.matmul %27, %28, %cst_23 {dimension_numbers = #tpu.dot_dimension_numbers<[1], [0], [0], [1], [0, 0, 1, 1], [], []>} : vector<1x128xf32>, vector<128x128xf32>, vector<1x128xf32> -> vector<1x128xf32>
      %c0_24 = arith.constant 0 : index
      %c0_25 = arith.constant 0 : index
      %30 = vector.load %arg7[%c0_24, %c0_25] : memref<1x128xf32, #tpu.memory_space<vmem>>, vector<1x128xf32>
      %31 = arith.addf %29, %30 : vector<1x128xf32>
      %32 = math.tanh %31 : vector<1x128xf32>
      %c0_26 = arith.constant 0 : index
      %c0_27 = arith.constant 0 : index
      %33 = vector.load %arg8[%c0_26, %c0_27] : memref<128x128xf32, #tpu.memory_space<vmem>>, vector<128x128xf32>
      %cst_28 = arith.constant dense<0.000000e+00> : vector<1x128xf32>
      %34 = tpu.matmul %32, %33, %cst_28 {dimension_numbers = #tpu.dot_dimension_numbers<[1], [0], [0], [1], [0, 0, 1, 1], [], []>} : vector<1x128xf32>, vector<128x128xf32>, vector<1x128xf32> -> vector<1x128xf32>
      %c0_29 = arith.constant 0 : index
      %c0_30 = arith.constant 0 : index
      %35 = vector.load %arg9[%c0_29, %c0_30] : memref<1x128xf32, #tpu.memory_space<vmem>>, vector<1x128xf32>
      %36 = arith.addf %34, %35 : vector<1x128xf32>
      %cst_31 = arith.constant 5.000000e-01 : f32
      %37 = arith.mulf %cst_31, %14 : f32
      %38 = vector.broadcast %37 : f32 to vector<1x128xf32>
      %39 = arith.mulf %38, %36 : vector<1x128xf32>
      %40 = arith.addf %arg14, %39 : vector<1x128xf32>
      %c0_32 = arith.constant 0 : index
      %c0_33 = arith.constant 0 : index
      %41 = vector.load %arg6[%c0_32, %c0_33] : memref<128x128xf32, #tpu.memory_space<vmem>>, vector<128x128xf32>
      %cst_34 = arith.constant dense<0.000000e+00> : vector<1x128xf32>
      %42 = tpu.matmul %40, %41, %cst_34 {dimension_numbers = #tpu.dot_dimension_numbers<[1], [0], [0], [1], [0, 0, 1, 1], [], []>} : vector<1x128xf32>, vector<128x128xf32>, vector<1x128xf32> -> vector<1x128xf32>
      %c0_35 = arith.constant 0 : index
      %c0_36 = arith.constant 0 : index
      %43 = vector.load %arg7[%c0_35, %c0_36] : memref<1x128xf32, #tpu.memory_space<vmem>>, vector<1x128xf32>
      %44 = arith.addf %42, %43 : vector<1x128xf32>
      %45 = math.tanh %44 : vector<1x128xf32>
      %c0_37 = arith.constant 0 : index
      %c0_38 = arith.constant 0 : index
      %46 = vector.load %arg8[%c0_37, %c0_38] : memref<128x128xf32, #tpu.memory_space<vmem>>, vector<128x128xf32>
      %cst_39 = arith.constant dense<0.000000e+00> : vector<1x128xf32>
      %47 = tpu.matmul %45, %46, %cst_39 {dimension_numbers = #tpu.dot_dimension_numbers<[1], [0], [0], [1], [0, 0, 1, 1], [], []>} : vector<1x128xf32>, vector<128x128xf32>, vector<1x128xf32> -> vector<1x128xf32>
      %c0_40 = arith.constant 0 : index
      %c0_41 = arith.constant 0 : index
      %48 = vector.load %arg9[%c0_40, %c0_41] : memref<1x128xf32, #tpu.memory_space<vmem>>, vector<1x128xf32>
      %49 = arith.addf %47, %48 : vector<1x128xf32>
      %50 = vector.broadcast %14 : f32 to vector<1x128xf32>
      %51 = arith.mulf %50, %49 : vector<1x128xf32>
      %52 = arith.addf %arg14, %51 : vector<1x128xf32>
      %c0_42 = arith.constant 0 : index
      %c0_43 = arith.constant 0 : index
      %53 = vector.load %arg6[%c0_42, %c0_43] : memref<128x128xf32, #tpu.memory_space<vmem>>, vector<128x128xf32>
      %cst_44 = arith.constant dense<0.000000e+00> : vector<1x128xf32>
      %54 = tpu.matmul %52, %53, %cst_44 {dimension_numbers = #tpu.dot_dimension_numbers<[1], [0], [0], [1], [0, 0, 1, 1], [], []>} : vector<1x128xf32>, vector<128x128xf32>, vector<1x128xf32> -> vector<1x128xf32>
      %c0_45 = arith.constant 0 : index
      %c0_46 = arith.constant 0 : index
      %55 = vector.load %arg7[%c0_45, %c0_46] : memref<1x128xf32, #tpu.memory_space<vmem>>, vector<1x128xf32>
      %56 = arith.addf %54, %55 : vector<1x128xf32>
      %57 = math.tanh %56 : vector<1x128xf32>
      %c0_47 = arith.constant 0 : index
      %c0_48 = arith.constant 0 : index
      %58 = vector.load %arg8[%c0_47, %c0_48] : memref<128x128xf32, #tpu.memory_space<vmem>>, vector<128x128xf32>
      %cst_49 = arith.constant dense<0.000000e+00> : vector<1x128xf32>
      %59 = tpu.matmul %57, %58, %cst_49 {dimension_numbers = #tpu.dot_dimension_numbers<[1], [0], [0], [1], [0, 0, 1, 1], [], []>} : vector<1x128xf32>, vector<128x128xf32>, vector<1x128xf32> -> vector<1x128xf32>
      %c0_50 = arith.constant 0 : index
      %c0_51 = arith.constant 0 : index
      %60 = vector.load %arg9[%c0_50, %c0_51] : memref<1x128xf32, #tpu.memory_space<vmem>>, vector<1x128xf32>
      %61 = arith.addf %59, %60 : vector<1x128xf32>
      %cst_52 = arith.constant 0.166666672 : f32
      %62 = arith.mulf %14, %cst_52 : f32
      %cst_53 = arith.constant 2.000000e+00 : f32
      %63 = vector.broadcast %cst_53 : f32 to vector<1x128xf32>
      %64 = arith.mulf %63, %36 : vector<1x128xf32>
      %65 = arith.addf %23, %64 : vector<1x128xf32>
      %cst_54 = arith.constant 2.000000e+00 : f32
      %66 = vector.broadcast %cst_54 : f32 to vector<1x128xf32>
      %67 = arith.mulf %66, %49 : vector<1x128xf32>
      %68 = arith.addf %65, %67 : vector<1x128xf32>
      %69 = arith.addf %68, %61 : vector<1x128xf32>
      %70 = vector.broadcast %62 : f32 to vector<1x128xf32>
      %71 = arith.mulf %70, %69 : vector<1x128xf32>
      %72 = arith.addf %arg14, %71 : vector<1x128xf32>
      %c1_i32_55 = arith.constant 1 : i32
      %c0_56 = arith.constant 0 : index
      %c0_57 = arith.constant 0 : index
      %73 = vector.load %arg6[%c0_56, %c0_57] : memref<128x128xf32, #tpu.memory_space<vmem>>, vector<128x128xf32>
      %cst_58 = arith.constant dense<0.000000e+00> : vector<1x128xf32>
      %74 = tpu.matmul %72, %73, %cst_58 {dimension_numbers = #tpu.dot_dimension_numbers<[1], [0], [0], [1], [0, 0, 1, 1], [], []>} : vector<1x128xf32>, vector<128x128xf32>, vector<1x128xf32> -> vector<1x128xf32>
      %c0_59 = arith.constant 0 : index
      %c0_60 = arith.constant 0 : index
      %75 = vector.load %arg7[%c0_59, %c0_60] : memref<1x128xf32, #tpu.memory_space<vmem>>, vector<1x128xf32>
      %76 = arith.addf %74, %75 : vector<1x128xf32>
      %77 = math.tanh %76 : vector<1x128xf32>
      %c0_61 = arith.constant 0 : index
      %c0_62 = arith.constant 0 : index
      %78 = vector.load %arg8[%c0_61, %c0_62] : memref<128x128xf32, #tpu.memory_space<vmem>>, vector<128x128xf32>
      %cst_63 = arith.constant dense<0.000000e+00> : vector<1x128xf32>
      %79 = tpu.matmul %77, %78, %cst_63 {dimension_numbers = #tpu.dot_dimension_numbers<[1], [0], [0], [1], [0, 0, 1, 1], [], []>} : vector<1x128xf32>, vector<128x128xf32>, vector<1x128xf32> -> vector<1x128xf32>
      %c0_64 = arith.constant 0 : index
      %c0_65 = arith.constant 0 : index
      %80 = vector.load %arg9[%c0_64, %c0_65] : memref<1x128xf32, #tpu.memory_space<vmem>>, vector<1x128xf32>
      %81 = arith.addf %79, %80 : vector<1x128xf32>
      %cst_66 = arith.constant 5.000000e-01 : f32
      %82 = arith.mulf %cst_66, %14 : f32
      %83 = vector.broadcast %82 : f32 to vector<1x128xf32>
      %84 = arith.mulf %83, %81 : vector<1x128xf32>
      %85 = arith.addf %72, %84 : vector<1x128xf32>
      %c0_67 = arith.constant 0 : index
      %c0_68 = arith.constant 0 : index
      %86 = vector.load %arg6[%c0_67, %c0_68] : memref<128x128xf32, #tpu.memory_space<vmem>>, vector<128x128xf32>
      %cst_69 = arith.constant dense<0.000000e+00> : vector<1x128xf32>
      %87 = tpu.matmul %85, %86, %cst_69 {dimension_numbers = #tpu.dot_dimension_numbers<[1], [0], [0], [1], [0, 0, 1, 1], [], []>} : vector<1x128xf32>, vector<128x128xf32>, vector<1x128xf32> -> vector<1x128xf32>
      %c0_70 = arith.constant 0 : index
      %c0_71 = arith.constant 0 : index
      %88 = vector.load %arg7[%c0_70, %c0_71] : memref<1x128xf32, #tpu.memory_space<vmem>>, vector<1x128xf32>
      %89 = arith.addf %87, %88 : vector<1x128xf32>
      %90 = math.tanh %89 : vector<1x128xf32>
      %c0_72 = arith.constant 0 : index
      %c0_73 = arith.constant 0 : index
      %91 = vector.load %arg8[%c0_72, %c0_73] : memref<128x128xf32, #tpu.memory_space<vmem>>, vector<128x128xf32>
      %cst_74 = arith.constant dense<0.000000e+00> : vector<1x128xf32>
      %92 = tpu.matmul %90, %91, %cst_74 {dimension_numbers = #tpu.dot_dimension_numbers<[1], [0], [0], [1], [0, 0, 1, 1], [], []>} : vector<1x128xf32>, vector<128x128xf32>, vector<1x128xf32> -> vector<1x128xf32>
      %c0_75 = arith.constant 0 : index
      %c0_76 = arith.constant 0 : index
      %93 = vector.load %arg9[%c0_75, %c0_76] : memref<1x128xf32, #tpu.memory_space<vmem>>, vector<1x128xf32>
      %94 = arith.addf %92, %93 : vector<1x128xf32>
      %cst_77 = arith.constant 5.000000e-01 : f32
      %95 = arith.mulf %cst_77, %14 : f32
      %96 = vector.broadcast %95 : f32 to vector<1x128xf32>
      %97 = arith.mulf %96, %94 : vector<1x128xf32>
      %98 = arith.addf %72, %97 : vector<1x128xf32>
      %c0_78 = arith.constant 0 : index
      %c0_79 = arith.constant 0 : index
      %99 = vector.load %arg6[%c0_78, %c0_79] : memref<128x128xf32, #tpu.memory_space<vmem>>, vector<128x128xf32>
      %cst_80 = arith.constant dense<0.000000e+00> : vector<1x128xf32>
      %100 = tpu.matmul %98, %99, %cst_80 {dimension_numbers = #tpu.dot_dimension_numbers<[1], [0], [0], [1], [0, 0, 1, 1], [], []>} : vector<1x128xf32>, vector<128x128xf32>, vector<1x128xf32> -> vector<1x128xf32>
      %c0_81 = arith.constant 0 : index
      %c0_82 = arith.constant 0 : index
      %101 = vector.load %arg7[%c0_81, %c0_82] : memref<1x128xf32, #tpu.memory_space<vmem>>, vector<1x128xf32>
      %102 = arith.addf %100, %101 : vector<1x128xf32>
      %103 = math.tanh %102 : vector<1x128xf32>
      %c0_83 = arith.constant 0 : index
      %c0_84 = arith.constant 0 : index
      %104 = vector.load %arg8[%c0_83, %c0_84] : memref<128x128xf32, #tpu.memory_space<vmem>>, vector<128x128xf32>
      %cst_85 = arith.constant dense<0.000000e+00> : vector<1x128xf32>
      %105 = tpu.matmul %103, %104, %cst_85 {dimension_numbers = #tpu.dot_dimension_numbers<[1], [0], [0], [1], [0, 0, 1, 1], [], []>} : vector<1x128xf32>, vector<128x128xf32>, vector<1x128xf32> -> vector<1x128xf32>
      %c0_86 = arith.constant 0 : index
      %c0_87 = arith.constant 0 : index
      %106 = vector.load %arg9[%c0_86, %c0_87] : memref<1x128xf32, #tpu.memory_space<vmem>>, vector<1x128xf32>
      %107 = arith.addf %105, %106 : vector<1x128xf32>
      %108 = vector.broadcast %14 : f32 to vector<1x128xf32>
      %109 = arith.mulf %108, %107 : vector<1x128xf32>
      %110 = arith.addf %72, %109 : vector<1x128xf32>
      %c0_88 = arith.constant 0 : index
      %c0_89 = arith.constant 0 : index
      %111 = vector.load %arg6[%c0_88, %c0_89] : memref<128x128xf32, #tpu.memory_space<vmem>>, vector<128x128xf32>
      %cst_90 = arith.constant dense<0.000000e+00> : vector<1x128xf32>
      %112 = tpu.matmul %110, %111, %cst_90 {dimension_numbers = #tpu.dot_dimension_numbers<[1], [0], [0], [1], [0, 0, 1, 1], [], []>} : vector<1x128xf32>, vector<128x128xf32>, vector<1x128xf32> -> vector<1x128xf32>
      %c0_91 = arith.constant 0 : index
      %c0_92 = arith.constant 0 : index
      %113 = vector.load %arg7[%c0_91, %c0_92] : memref<1x128xf32, #tpu.memory_space<vmem>>, vector<1x128xf32>
      %114 = arith.addf %112, %113 : vector<1x128xf32>
      %115 = math.tanh %114 : vector<1x128xf32>
      %c0_93 = arith.constant 0 : index
      %c0_94 = arith.constant 0 : index
      %116 = vector.load %arg8[%c0_93, %c0_94] : memref<128x128xf32, #tpu.memory_space<vmem>>, vector<128x128xf32>
      %cst_95 = arith.constant dense<0.000000e+00> : vector<1x128xf32>
      %117 = tpu.matmul %115, %116, %cst_95 {dimension_numbers = #tpu.dot_dimension_numbers<[1], [0], [0], [1], [0, 0, 1, 1], [], []>} : vector<1x128xf32>, vector<128x128xf32>, vector<1x128xf32> -> vector<1x128xf32>
      %c0_96 = arith.constant 0 : index
      %c0_97 = arith.constant 0 : index
      %118 = vector.load %arg9[%c0_96, %c0_97] : memref<1x128xf32, #tpu.memory_space<vmem>>, vector<1x128xf32>
      %119 = arith.addf %117, %118 : vector<1x128xf32>
      %cst_98 = arith.constant 0.166666672 : f32
      %120 = arith.mulf %14, %cst_98 : f32
      %cst_99 = arith.constant 2.000000e+00 : f32
      %121 = vector.broadcast %cst_99 : f32 to vector<1x128xf32>
      %122 = arith.mulf %121, %94 : vector<1x128xf32>
      %123 = arith.addf %81, %122 : vector<1x128xf32>
      %cst_100 = arith.constant 2.000000e+00 : f32
      %124 = vector.broadcast %cst_100 : f32 to vector<1x128xf32>
      %125 = arith.mulf %124, %107 : vector<1x128xf32>
      %126 = arith.addf %123, %125 : vector<1x128xf32>
      %127 = arith.addf %126, %119 : vector<1x128xf32>
      %128 = vector.broadcast %120 : f32 to vector<1x128xf32>
      %129 = arith.mulf %128, %127 : vector<1x128xf32>
      %130 = arith.addf %72, %129 : vector<1x128xf32>
      %c2_i32 = arith.constant 2 : i32
      %c0_101 = arith.constant 0 : index
      %c0_102 = arith.constant 0 : index
      %131 = vector.load %arg6[%c0_101, %c0_102] : memref<128x128xf32, #tpu.memory_space<vmem>>, vector<128x128xf32>
      %cst_103 = arith.constant dense<0.000000e+00> : vector<1x128xf32>
      %132 = tpu.matmul %130, %131, %cst_103 {dimension_numbers = #tpu.dot_dimension_numbers<[1], [0], [0], [1], [0, 0, 1, 1], [], []>} : vector<1x128xf32>, vector<128x128xf32>, vector<1x128xf32> -> vector<1x128xf32>
      %c0_104 = arith.constant 0 : index
      %c0_105 = arith.constant 0 : index
      %133 = vector.load %arg7[%c0_104, %c0_105] : memref<1x128xf32, #tpu.memory_space<vmem>>, vector<1x128xf32>
      %134 = arith.addf %132, %133 : vector<1x128xf32>
      %135 = math.tanh %134 : vector<1x128xf32>
      %c0_106 = arith.constant 0 : index
      %c0_107 = arith.constant 0 : index
      %136 = vector.load %arg8[%c0_106, %c0_107] : memref<128x128xf32, #tpu.memory_space<vmem>>, vector<128x128xf32>
      %cst_108 = arith.constant dense<0.000000e+00> : vector<1x128xf32>
      %137 = tpu.matmul %135, %136, %cst_108 {dimension_numbers = #tpu.dot_dimension_numbers<[1], [0], [0], [1], [0, 0, 1, 1], [], []>} : vector<1x128xf32>, vector<128x128xf32>, vector<1x128xf32> -> vector<1x128xf32>
      %c0_109 = arith.constant 0 : index
      %c0_110 = arith.constant 0 : index
      %138 = vector.load %arg9[%c0_109, %c0_110] : memref<1x128xf32, #tpu.memory_space<vmem>>, vector<1x128xf32>
      %139 = arith.addf %137, %138 : vector<1x128xf32>
      %cst_111 = arith.constant 5.000000e-01 : f32
      %140 = arith.mulf %cst_111, %14 : f32
      %141 = vector.broadcast %140 : f32 to vector<1x128xf32>
      %142 = arith.mulf %141, %139 : vector<1x128xf32>
      %143 = arith.addf %130, %142 : vector<1x128xf32>
      %c0_112 = arith.constant 0 : index
      %c0_113 = arith.constant 0 : index
      %144 = vector.load %arg6[%c0_112, %c0_113] : memref<128x128xf32, #tpu.memory_space<vmem>>, vector<128x128xf32>
      %cst_114 = arith.constant dense<0.000000e+00> : vector<1x128xf32>
      %145 = tpu.matmul %143, %144, %cst_114 {dimension_numbers = #tpu.dot_dimension_numbers<[1], [0], [0], [1], [0, 0, 1, 1], [], []>} : vector<1x128xf32>, vector<128x128xf32>, vector<1x128xf32> -> vector<1x128xf32>
      %c0_115 = arith.constant 0 : index
      %c0_116 = arith.constant 0 : index
      %146 = vector.load %arg7[%c0_115, %c0_116] : memref<1x128xf32, #tpu.memory_space<vmem>>, vector<1x128xf32>
      %147 = arith.addf %145, %146 : vector<1x128xf32>
      %148 = math.tanh %147 : vector<1x128xf32>
      %c0_117 = arith.constant 0 : index
      %c0_118 = arith.constant 0 : index
      %149 = vector.load %arg8[%c0_117, %c0_118] : memref<128x128xf32, #tpu.memory_space<vmem>>, vector<128x128xf32>
      %cst_119 = arith.constant dense<0.000000e+00> : vector<1x128xf32>
      %150 = tpu.matmul %148, %149, %cst_119 {dimension_numbers = #tpu.dot_dimension_numbers<[1], [0], [0], [1], [0, 0, 1, 1], [], []>} : vector<1x128xf32>, vector<128x128xf32>, vector<1x128xf32> -> vector<1x128xf32>
      %c0_120 = arith.constant 0 : index
      %c0_121 = arith.constant 0 : index
      %151 = vector.load %arg9[%c0_120, %c0_121] : memref<1x128xf32, #tpu.memory_space<vmem>>, vector<1x128xf32>
      %152 = arith.addf %150, %151 : vector<1x128xf32>
      %cst_122 = arith.constant 5.000000e-01 : f32
      %153 = arith.mulf %cst_122, %14 : f32
      %154 = vector.broadcast %153 : f32 to vector<1x128xf32>
      %155 = arith.mulf %154, %152 : vector<1x128xf32>
      %156 = arith.addf %130, %155 : vector<1x128xf32>
      %c0_123 = arith.constant 0 : index
      %c0_124 = arith.constant 0 : index
      %157 = vector.load %arg6[%c0_123, %c0_124] : memref<128x128xf32, #tpu.memory_space<vmem>>, vector<128x128xf32>
      %cst_125 = arith.constant dense<0.000000e+00> : vector<1x128xf32>
      %158 = tpu.matmul %156, %157, %cst_125 {dimension_numbers = #tpu.dot_dimension_numbers<[1], [0], [0], [1], [0, 0, 1, 1], [], []>} : vector<1x128xf32>, vector<128x128xf32>, vector<1x128xf32> -> vector<1x128xf32>
      %c0_126 = arith.constant 0 : index
      %c0_127 = arith.constant 0 : index
      %159 = vector.load %arg7[%c0_126, %c0_127] : memref<1x128xf32, #tpu.memory_space<vmem>>, vector<1x128xf32>
      %160 = arith.addf %158, %159 : vector<1x128xf32>
      %161 = math.tanh %160 : vector<1x128xf32>
      %c0_128 = arith.constant 0 : index
      %c0_129 = arith.constant 0 : index
      %162 = vector.load %arg8[%c0_128, %c0_129] : memref<128x128xf32, #tpu.memory_space<vmem>>, vector<128x128xf32>
      %cst_130 = arith.constant dense<0.000000e+00> : vector<1x128xf32>
      %163 = tpu.matmul %161, %162, %cst_130 {dimension_numbers = #tpu.dot_dimension_numbers<[1], [0], [0], [1], [0, 0, 1, 1], [], []>} : vector<1x128xf32>, vector<128x128xf32>, vector<1x128xf32> -> vector<1x128xf32>
      %c0_131 = arith.constant 0 : index
      %c0_132 = arith.constant 0 : index
      %164 = vector.load %arg9[%c0_131, %c0_132] : memref<1x128xf32, #tpu.memory_space<vmem>>, vector<1x128xf32>
      %165 = arith.addf %163, %164 : vector<1x128xf32>
      %166 = vector.broadcast %14 : f32 to vector<1x128xf32>
      %167 = arith.mulf %166, %165 : vector<1x128xf32>
      %168 = arith.addf %130, %167 : vector<1x128xf32>
      %c0_133 = arith.constant 0 : index
      %c0_134 = arith.constant 0 : index
      %169 = vector.load %arg6[%c0_133, %c0_134] : memref<128x128xf32, #tpu.memory_space<vmem>>, vector<128x128xf32>
      %cst_135 = arith.constant dense<0.000000e+00> : vector<1x128xf32>
      %170 = tpu.matmul %168, %169, %cst_135 {dimension_numbers = #tpu.dot_dimension_numbers<[1], [0], [0], [1], [0, 0, 1, 1], [], []>} : vector<1x128xf32>, vector<128x128xf32>, vector<1x128xf32> -> vector<1x128xf32>
      %c0_136 = arith.constant 0 : index
      %c0_137 = arith.constant 0 : index
      %171 = vector.load %arg7[%c0_136, %c0_137] : memref<1x128xf32, #tpu.memory_space<vmem>>, vector<1x128xf32>
      %172 = arith.addf %170, %171 : vector<1x128xf32>
      %173 = math.tanh %172 : vector<1x128xf32>
      %c0_138 = arith.constant 0 : index
      %c0_139 = arith.constant 0 : index
      %174 = vector.load %arg8[%c0_138, %c0_139] : memref<128x128xf32, #tpu.memory_space<vmem>>, vector<128x128xf32>
      %cst_140 = arith.constant dense<0.000000e+00> : vector<1x128xf32>
      %175 = tpu.matmul %173, %174, %cst_140 {dimension_numbers = #tpu.dot_dimension_numbers<[1], [0], [0], [1], [0, 0, 1, 1], [], []>} : vector<1x128xf32>, vector<128x128xf32>, vector<1x128xf32> -> vector<1x128xf32>
      %c0_141 = arith.constant 0 : index
      %c0_142 = arith.constant 0 : index
      %176 = vector.load %arg9[%c0_141, %c0_142] : memref<1x128xf32, #tpu.memory_space<vmem>>, vector<1x128xf32>
      %177 = arith.addf %175, %176 : vector<1x128xf32>
      %cst_143 = arith.constant 0.166666672 : f32
      %178 = arith.mulf %14, %cst_143 : f32
      %cst_144 = arith.constant 2.000000e+00 : f32
      %179 = vector.broadcast %cst_144 : f32 to vector<1x128xf32>
      %180 = arith.mulf %179, %152 : vector<1x128xf32>
      %181 = arith.addf %139, %180 : vector<1x128xf32>
      %cst_145 = arith.constant 2.000000e+00 : f32
      %182 = vector.broadcast %cst_145 : f32 to vector<1x128xf32>
      %183 = arith.mulf %182, %165 : vector<1x128xf32>
      %184 = arith.addf %181, %183 : vector<1x128xf32>
      %185 = arith.addf %184, %177 : vector<1x128xf32>
      %186 = vector.broadcast %178 : f32 to vector<1x128xf32>
      %187 = arith.mulf %186, %185 : vector<1x128xf32>
      %188 = arith.addf %130, %187 : vector<1x128xf32>
      %c3_i32 = arith.constant 3 : i32
      %c0_146 = arith.constant 0 : index
      %c0_147 = arith.constant 0 : index
      %189 = vector.load %arg6[%c0_146, %c0_147] : memref<128x128xf32, #tpu.memory_space<vmem>>, vector<128x128xf32>
      %cst_148 = arith.constant dense<0.000000e+00> : vector<1x128xf32>
      %190 = tpu.matmul %188, %189, %cst_148 {dimension_numbers = #tpu.dot_dimension_numbers<[1], [0], [0], [1], [0, 0, 1, 1], [], []>} : vector<1x128xf32>, vector<128x128xf32>, vector<1x128xf32> -> vector<1x128xf32>
      %c0_149 = arith.constant 0 : index
      %c0_150 = arith.constant 0 : index
      %191 = vector.load %arg7[%c0_149, %c0_150] : memref<1x128xf32, #tpu.memory_space<vmem>>, vector<1x128xf32>
      %192 = arith.addf %190, %191 : vector<1x128xf32>
      %193 = math.tanh %192 : vector<1x128xf32>
      %c0_151 = arith.constant 0 : index
      %c0_152 = arith.constant 0 : index
      %194 = vector.load %arg8[%c0_151, %c0_152] : memref<128x128xf32, #tpu.memory_space<vmem>>, vector<128x128xf32>
      %cst_153 = arith.constant dense<0.000000e+00> : vector<1x128xf32>
      %195 = tpu.matmul %193, %194, %cst_153 {dimension_numbers = #tpu.dot_dimension_numbers<[1], [0], [0], [1], [0, 0, 1, 1], [], []>} : vector<1x128xf32>, vector<128x128xf32>, vector<1x128xf32> -> vector<1x128xf32>
      %c0_154 = arith.constant 0 : index
      %c0_155 = arith.constant 0 : index
      %196 = vector.load %arg9[%c0_154, %c0_155] : memref<1x128xf32, #tpu.memory_space<vmem>>, vector<1x128xf32>
      %197 = arith.addf %195, %196 : vector<1x128xf32>
      %cst_156 = arith.constant 5.000000e-01 : f32
      %198 = arith.mulf %cst_156, %14 : f32
      %199 = vector.broadcast %198 : f32 to vector<1x128xf32>
      %200 = arith.mulf %199, %197 : vector<1x128xf32>
      %201 = arith.addf %188, %200 : vector<1x128xf32>
      %c0_157 = arith.constant 0 : index
      %c0_158 = arith.constant 0 : index
      %202 = vector.load %arg6[%c0_157, %c0_158] : memref<128x128xf32, #tpu.memory_space<vmem>>, vector<128x128xf32>
      %cst_159 = arith.constant dense<0.000000e+00> : vector<1x128xf32>
      %203 = tpu.matmul %201, %202, %cst_159 {dimension_numbers = #tpu.dot_dimension_numbers<[1], [0], [0], [1], [0, 0, 1, 1], [], []>} : vector<1x128xf32>, vector<128x128xf32>, vector<1x128xf32> -> vector<1x128xf32>
      %c0_160 = arith.constant 0 : index
      %c0_161 = arith.constant 0 : index
      %204 = vector.load %arg7[%c0_160, %c0_161] : memref<1x128xf32, #tpu.memory_space<vmem>>, vector<1x128xf32>
      %205 = arith.addf %203, %204 : vector<1x128xf32>
      %206 = math.tanh %205 : vector<1x128xf32>
      %c0_162 = arith.constant 0 : index
      %c0_163 = arith.constant 0 : index
      %207 = vector.load %arg8[%c0_162, %c0_163] : memref<128x128xf32, #tpu.memory_space<vmem>>, vector<128x128xf32>
      %cst_164 = arith.constant dense<0.000000e+00> : vector<1x128xf32>
      %208 = tpu.matmul %206, %207, %cst_164 {dimension_numbers = #tpu.dot_dimension_numbers<[1], [0], [0], [1], [0, 0, 1, 1], [], []>} : vector<1x128xf32>, vector<128x128xf32>, vector<1x128xf32> -> vector<1x128xf32>
      %c0_165 = arith.constant 0 : index
      %c0_166 = arith.constant 0 : index
      %209 = vector.load %arg9[%c0_165, %c0_166] : memref<1x128xf32, #tpu.memory_space<vmem>>, vector<1x128xf32>
      %210 = arith.addf %208, %209 : vector<1x128xf32>
      %cst_167 = arith.constant 5.000000e-01 : f32
      %211 = arith.mulf %cst_167, %14 : f32
      %212 = vector.broadcast %211 : f32 to vector<1x128xf32>
      %213 = arith.mulf %212, %210 : vector<1x128xf32>
      %214 = arith.addf %188, %213 : vector<1x128xf32>
      %c0_168 = arith.constant 0 : index
      %c0_169 = arith.constant 0 : index
      %215 = vector.load %arg6[%c0_168, %c0_169] : memref<128x128xf32, #tpu.memory_space<vmem>>, vector<128x128xf32>
      %cst_170 = arith.constant dense<0.000000e+00> : vector<1x128xf32>
      %216 = tpu.matmul %214, %215, %cst_170 {dimension_numbers = #tpu.dot_dimension_numbers<[1], [0], [0], [1], [0, 0, 1, 1], [], []>} : vector<1x128xf32>, vector<128x128xf32>, vector<1x128xf32> -> vector<1x128xf32>
      %c0_171 = arith.constant 0 : index
      %c0_172 = arith.constant 0 : index
      %217 = vector.load %arg7[%c0_171, %c0_172] : memref<1x128xf32, #tpu.memory_space<vmem>>, vector<1x128xf32>
      %218 = arith.addf %216, %217 : vector<1x128xf32>
      %219 = math.tanh %218 : vector<1x128xf32>
      %c0_173 = arith.constant 0 : index
      %c0_174 = arith.constant 0 : index
      %220 = vector.load %arg8[%c0_173, %c0_174] : memref<128x128xf32, #tpu.memory_space<vmem>>, vector<128x128xf32>
      %cst_175 = arith.constant dense<0.000000e+00> : vector<1x128xf32>
      %221 = tpu.matmul %219, %220, %cst_175 {dimension_numbers = #tpu.dot_dimension_numbers<[1], [0], [0], [1], [0, 0, 1, 1], [], []>} : vector<1x128xf32>, vector<128x128xf32>, vector<1x128xf32> -> vector<1x128xf32>
      %c0_176 = arith.constant 0 : index
      %c0_177 = arith.constant 0 : index
      %222 = vector.load %arg9[%c0_176, %c0_177] : memref<1x128xf32, #tpu.memory_space<vmem>>, vector<1x128xf32>
      %223 = arith.addf %221, %222 : vector<1x128xf32>
      %224 = vector.broadcast %14 : f32 to vector<1x128xf32>
      %225 = arith.mulf %224, %223 : vector<1x128xf32>
      %226 = arith.addf %188, %225 : vector<1x128xf32>
      %c0_178 = arith.constant 0 : index
      %c0_179 = arith.constant 0 : index
      %227 = vector.load %arg6[%c0_178, %c0_179] : memref<128x128xf32, #tpu.memory_space<vmem>>, vector<128x128xf32>
      %cst_180 = arith.constant dense<0.000000e+00> : vector<1x128xf32>
      %228 = tpu.matmul %226, %227, %cst_180 {dimension_numbers = #tpu.dot_dimension_numbers<[1], [0], [0], [1], [0, 0, 1, 1], [], []>} : vector<1x128xf32>, vector<128x128xf32>, vector<1x128xf32> -> vector<1x128xf32>
      %c0_181 = arith.constant 0 : index
      %c0_182 = arith.constant 0 : index
      %229 = vector.load %arg7[%c0_181, %c0_182] : memref<1x128xf32, #tpu.memory_space<vmem>>, vector<1x128xf32>
      %230 = arith.addf %228, %229 : vector<1x128xf32>
      %231 = math.tanh %230 : vector<1x128xf32>
      %c0_183 = arith.constant 0 : index
      %c0_184 = arith.constant 0 : index
      %232 = vector.load %arg8[%c0_183, %c0_184] : memref<128x128xf32, #tpu.memory_space<vmem>>, vector<128x128xf32>
      %cst_185 = arith.constant dense<0.000000e+00> : vector<1x128xf32>
      %233 = tpu.matmul %231, %232, %cst_185 {dimension_numbers = #tpu.dot_dimension_numbers<[1], [0], [0], [1], [0, 0, 1, 1], [], []>} : vector<1x128xf32>, vector<128x128xf32>, vector<1x128xf32> -> vector<1x128xf32>
      %c0_186 = arith.constant 0 : index
      %c0_187 = arith.constant 0 : index
      %234 = vector.load %arg9[%c0_186, %c0_187] : memref<1x128xf32, #tpu.memory_space<vmem>>, vector<1x128xf32>
      %235 = arith.addf %233, %234 : vector<1x128xf32>
      %cst_188 = arith.constant 0.166666672 : f32
      %236 = arith.mulf %14, %cst_188 : f32
      %cst_189 = arith.constant 2.000000e+00 : f32
      %237 = vector.broadcast %cst_189 : f32 to vector<1x128xf32>
      %238 = arith.mulf %237, %210 : vector<1x128xf32>
      %239 = arith.addf %197, %238 : vector<1x128xf32>
      %cst_190 = arith.constant 2.000000e+00 : f32
      %240 = vector.broadcast %cst_190 : f32 to vector<1x128xf32>
      %241 = arith.mulf %240, %223 : vector<1x128xf32>
      %242 = arith.addf %239, %241 : vector<1x128xf32>
      %243 = arith.addf %242, %235 : vector<1x128xf32>
      %244 = vector.broadcast %236 : f32 to vector<1x128xf32>
      %245 = arith.mulf %244, %243 : vector<1x128xf32>
      %246 = arith.addf %188, %245 : vector<1x128xf32>
      %247 = arith.index_cast %arg13 : i32 to index
      %c0_191 = arith.constant 0 : index
      %248 = vector.load %arg1[%247, %c0_191] : memref<8x128xf32, #tpu.memory_space<vmem>>, vector<1x128xf32>
      %c0_192 = arith.constant 0 : index
      %c0_193 = arith.constant 0 : index
      %249 = vector.load %arg2[%c0_192, %c0_193] : memref<128x128xf32, #tpu.memory_space<vmem>>, vector<128x128xf32>
      %cst_194 = arith.constant dense<0.000000e+00> : vector<1x128xf32>
      %250 = tpu.matmul %248, %249, %cst_194 {dimension_numbers = #tpu.dot_dimension_numbers<[1], [0], [0], [1], [0, 0, 1, 1], [], []>} : vector<1x128xf32>, vector<128x128xf32>, vector<1x128xf32> -> vector<1x128xf32>
      %c0_195 = arith.constant 0 : index
      %c0_196 = arith.constant 0 : index
      %251 = vector.load %arg3[%c0_195, %c0_196] : memref<1x128xf32, #tpu.memory_space<vmem>>, vector<1x128xf32>
      %252 = arith.addf %250, %251 : vector<1x128xf32>
      %c0_197 = arith.constant 0 : index
      %c0_198 = arith.constant 0 : index
      %253 = vector.load %arg4[%c0_197, %c0_198] : memref<128x128xf32, #tpu.memory_space<vmem>>, vector<128x128xf32>
      %cst_199 = arith.constant dense<0.000000e+00> : vector<1x128xf32>
      %254 = tpu.matmul %246, %253, %cst_199 {dimension_numbers = #tpu.dot_dimension_numbers<[1], [0], [0], [1], [0, 0, 1, 1], [], []>} : vector<1x128xf32>, vector<128x128xf32>, vector<1x128xf32> -> vector<1x128xf32>
      %255 = arith.addf %252, %254 : vector<1x128xf32>
      %c0_200 = arith.constant 0 : index
      %c0_201 = arith.constant 0 : index
      %256 = vector.load %arg5[%c0_200, %c0_201] : memref<1x128xf32, #tpu.memory_space<vmem>>, vector<1x128xf32>
      %257 = arith.addf %255, %256 : vector<1x128xf32>
      %258 = math.tanh %257 : vector<1x128xf32>
      scf.yield %258 : vector<1x128xf32>
    }
    %c7_i32_2 = arith.constant 7 : i32
    %c0 = arith.constant 0 : index
    %c0_3 = arith.constant 0 : index
    %3 = vector.load %arg10[%c0, %c0_3] : memref<128x128xf32, #tpu.memory_space<vmem>>, vector<128x128xf32>
    %cst_4 = arith.constant dense<0.000000e+00> : vector<1x128xf32>
    %4 = tpu.matmul %2, %3, %cst_4 {dimension_numbers = #tpu.dot_dimension_numbers<[1], [0], [0], [1], [0, 0, 1, 1], [], []>} : vector<1x128xf32>, vector<128x128xf32>, vector<1x128xf32> -> vector<1x128xf32>
    %c0_5 = arith.constant 0 : index
    %c0_6 = arith.constant 0 : index
    %5 = vector.load %arg11[%c0_5, %c0_6] : memref<1x128xf32, #tpu.memory_space<vmem>>, vector<1x128xf32>
    %6 = arith.addf %4, %5 : vector<1x128xf32>
    %c0_7 = arith.constant 0 : index
    %c0_8 = arith.constant 0 : index
    %7 = vector.load %arg12[%c0_7, %c0_8] : memref<1x128xf32, #tpu.memory_space<vmem>>, vector<1x128xf32>
    tpu.vector_store %arg12[%c0_7, %c0_8], %6 {strides = array<i32>} : memref<1x128xf32, #tpu.memory_space<vmem>>, vector<1x128xf32>,
    return
  }
}

</mosaic_0001>

<bundles_post_ra>
// kernel: ode_rnn_forward.1
= control target key start
LH: loop header
LB: loop body
LE: loop exit
PB: predicated region body
PF: predicated region fallthrough
CT: control target
= control target key end

     0   :  { %17 = vsyncpa [#allocation4], 0  ;;  %s6587_s0 = inlined_call_operand.vmem [shape: f32[8], index: 0, kind: input, shape index: {}]   ;;  %s6588_s1 = inlined_call_operand.vmem [shape: f32[8,128], index: 1, kind: input, shape index: {}]   ;;  %s6589_s2 = inlined_call_operand.hbm [shape: f32[128,128], index: 2, kind: input, shape index: {}]   ;;  %s6590_s3 = inlined_call_operand.vmem [shape: f32[1,128], index: 3, kind: input, shape index: {}]   ;;  %s6591_s4 = inlined_call_operand.hbm [shape: f32[128,128], index: 4, kind: input, shape index: {}]   ;;  %s6592_s5 = inlined_call_operand.vmem [shape: f32[1,128], index: 5, kind: input, shape index: {}]   ;;  %s6593_s6 = inlined_call_operand.hbm [shape: f32[128,128], index: 6, kind: input, shape index: {}]   ;;  %s6594_s7 = inlined_call_operand.vmem [shape: f32[1,128], index: 7, kind: input, shape index: {}]   ;;  %s6595_s8 = inlined_call_operand.hbm [shape: f32[128,128], index: 8, kind: input, shape index: {}]   ;;  %s6596_s9 = inlined_call_operand.vmem [shape: f32[1,128], index: 9, kind: input, shape index: {}]   ;;  %s6597_s10 = inlined_call_operand.hbm [shape: f32[128,128], index: 10, kind: input, shape index: {}]   ;;  %s6598_s11 = inlined_call_operand.vmem [shape: f32[1,128], index: 11, kind: input, shape index: {}]   ;;  %s6599_s12 = inlined_call_operand.vmem [shape: f32[1,128], index: 12, kind: output, shape index: {}]  }
   0x1   :  { %18 = vsyncpa [#allocation3], 0 }
   0x2   :  { %19 = vsyncpa [#allocation7], 0 }
   0x3   :  { %20 = vsyncpa [#allocation10], 0  ;;  %s5638_s21 = smov [#allocation6]   ;;  %s5639_s23 = smov [#allocation9]  }
   0x4   :  { %s52_s22 = sshll.u32 %s5638_s21, 4  ;;  %s80_s24 = sshll.u32 %s5639_s23, 4  ;;  %s53_s22 = int_to_ptr.vmem [resolvable:$true] %s52_s22  ;;  %s5717_s24 = int_to_ptr.vmem [resolvable:$true] %s80_s24 }
   0x5   :  { %s5492_s27 = scalar_lea.hbm %s6591_s4, 2048 }
   0x6   :  { %p5493_p0 = scmp.ne.s32.totalorder %s6591_s4, %s5492_s27  ;;  %p5496_p1 = scmp.lt.u32.totalorder %s5492_s27, %s6591_s4 }
   0x8   :  { %p5498_p2 = pnand %p5496_p1, %p5493_p0 }
   0xa   :  { %5501 = shalt.err (!%p5498_p2)
}
   0xb   :  { %s5502_s14 = scalar_lea.vmem %s53_s22, 2048  ;;  %p5507_p4 = scmp.lt.s32.totalorder %s53_s22, %s53_s22 }
   0xc   :  { %p5503_p3 = scmp.ne.s32.totalorder %s53_s22, %s5502_s14  ;;  %p5508_p5 = scmp.lt.s32.totalorder %s5502_s14, %s5502_s14 }
   0xe   :  { %p5509_p6 = por %p5508_p5, %p5507_p4 }
  0x10   :  { %p5510_p7 = pnand %p5509_p6, %p5503_p3 }
  0x12   :  { %5513 = shalt.err (!%p5510_p7)
}
  0x13   :  { %s5640_s15 = smov 128   ;;  %s5641_s16 = smov 8  }
  0x14   :  { %58 = dma.hbm_to_vmem [thread:$0]  %s6591_s4, 2048, %s53_s22, [#allocation7], %s5640_s15, %s5640_s15, %s5641_s16  }
  0x15   :  { %s5514_s21 = scalar_lea.hbm %s6595_s8, 2048 }
  0x16   :  { %p5515_p8 = scmp.ne.s32.totalorder %s6595_s8, %s5514_s21  ;;  %p5518_p9 = scmp.lt.u32.totalorder %s5514_s21, %s6595_s8 }
  0x18   :  { %p5520_p10 = pnand %p5518_p9, %p5515_p8 }
  0x1a   :  { %5523 = shalt.err (!%p5520_p10)
}
  0x1b   :  { %s5524_s28 = scalar_lea.vmem %s5717_s24, 2048  ;;  %p5529_p12 = scmp.lt.s32.totalorder %s5717_s24, %s5717_s24 }
  0x1c   :  { %p5525_p11 = scmp.ne.s32.totalorder %s5717_s24, %s5524_s28  ;;  %p5530_p13 = scmp.lt.s32.totalorder %s5524_s28, %s5524_s28 }
  0x1e   :  { %p5531_p0 = por %p5530_p13, %p5529_p12 }
  0x20   :  { %p5532_p1 = pnand %p5531_p0, %p5525_p11 }
  0x22   :  { %5535 = shalt.err (!%p5532_p1)
}
  0x23   :  { %86 = dma.hbm_to_vmem [thread:$0]  %s6595_s8, 2048, %s5717_s24, [#allocation10], %s5640_s15, %s5640_s15, %s5641_s16  }
  0x24   :  { %s27_s13 = sshll.u32 %s6587_s0, 4  ;;  %s28_s13 = int_to_ptr.vmem [resolvable:$true] %s27_s13 }
  0x25   :  { %s5536_s14 = scalar_lea.vmem %s28_s13, 16  ;;  %p5541_p3 = scmp.lt.s32.totalorder %s28_s13, %s28_s13 }
  0x26   :  { %p5537_p2 = scmp.ne.s32.totalorder %s28_s13, %s5536_s14  ;;  %p5542_p4 = scmp.lt.s32.totalorder %s5536_s14, %s5536_s14 }
  0x28   :  { %p5543_p5 = por %p5542_p4, %p5541_p3 }
  0x2a   :  { %p5544_p6 = pnand %p5543_p5, %p5537_p2 }
  0x2c   :  { %5547 = shalt.err (!%p5544_p6)
}
  0x2d   :  { %s5642_s17 = smov [#allocation2]   ;;  %s5643_s18 = smov [#allocation5]  }
  0x2e   :  { %30 = dma.vmem_to_smem %s28_s13, 16, %s5642_s17, [#allocation4]  }
  0x2f   :  { %s38_s19 = sshll.u32 %s5643_s18, 4  ;;  %s5644_s20 = smov [#allocation8]   ;;  %s39_s19 = int_to_ptr.vmem [resolvable:$true] %s38_s19 }
  0x30   :  { %s66_s21 = sshll.u32 %s5644_s20, 4  ;;  %s5548_s23 = scalar_lea.hbm %s6589_s2, 2048  ;;  %s67_s21 = int_to_ptr.vmem [resolvable:$true] %s66_s21 }
  0x31   :  { %p5549_p7 = scmp.ne.s32.totalorder %s6589_s2, %s5548_s23  ;;  %p5552_p8 = scmp.lt.u32.totalorder %s5548_s23, %s6589_s2 }
  0x33   :  { %p5554_p9 = pnand %p5552_p8, %p5549_p7 }
  0x35   :  { %5557 = shalt.err (!%p5554_p9)
}
  0x36   :  { %s5558_s28 = scalar_lea.vmem %s39_s19, 2048  ;;  %p5563_p11 = scmp.lt.s32.totalorder %s39_s19, %s39_s19 }
  0x37   :  { %p5559_p10 = scmp.ne.s32.totalorder %s39_s19, %s5558_s28  ;;  %p5564_p12 = scmp.lt.s32.totalorder %s5558_s28, %s5558_s28 }
  0x39   :  { %p5565_p13 = por %p5564_p12, %p5563_p11 }
  0x3b   :  { %p5566_p0 = pnand %p5565_p13, %p5559_p10 }
  0x3d   :  { %5569 = shalt.err (!%p5566_p0)
}
  0x3e   :  { %44 = dma.hbm_to_vmem [thread:$0]  %s6589_s2, 2048, %s39_s19, [#allocation3], %s5640_s15, %s5640_s15, %s5641_s16  }
  0x3f   :  { %s5570_s13 = scalar_lea.hbm %s6593_s6, 2048 }
  0x40   :  { %p5571_p1 = scmp.ne.s32.totalorder %s6593_s6, %s5570_s13  ;;  %p5574_p2 = scmp.lt.u32.totalorder %s5570_s13, %s6593_s6 }
  0x42   :  { %p5576_p3 = pnand %p5574_p2, %p5571_p1 }
  0x44   :  { %5579 = shalt.err (!%p5576_p3)
}
  0x45   :  { %s5580_s8 = scalar_lea.vmem %s67_s21, 2048  ;;  %p5585_p5 = scmp.lt.s32.totalorder %s67_s21, %s67_s21 }
  0x46   :  { %p5581_p4 = scmp.ne.s32.totalorder %s67_s21, %s5580_s8  ;;  %p5586_p6 = scmp.lt.s32.totalorder %s5580_s8, %s5580_s8 }
  0x48   :  { %p5587_p7 = por %p5586_p6, %p5585_p5 }
  0x4a   :  { %p5588_p8 = pnand %p5587_p7, %p5581_p4 }
  0x4c   :  { %5591 = shalt.err (!%p5588_p8)
}
  0x4d   :  { %72 = dma.hbm_to_vmem [thread:$0]  %s6593_s6, 2048, %s67_s21, [#allocation7], %s5640_s15, %s5640_s15, %s5641_s16  }
  0x4e   :  { %s5645_s24 = smov [#allocation11]   ;;  %s5592_s26 = scalar_lea.hbm %s6597_s10, 2048 }
  0x4f   :  { %s94_s23 = sshll.u32 %s5645_s24, 4  ;;  %p5593_p9 = scmp.ne.s32.totalorder %s6597_s10, %s5592_s26  ;;  %s95_s23 = int_to_ptr.vmem [resolvable:$true] %s94_s23 }
  0x50   :  { %p5596_p10 = scmp.lt.u32.totalorder %s5592_s26, %s6597_s10 }
  0x52   :  { %p5598_p11 = pnand %p5596_p10, %p5593_p9 }
  0x54   :  { %5601 = shalt.err (!%p5598_p11)
}
  0x55   :  { %s5602_s29 = scalar_lea.vmem %s95_s23, 2048  ;;  %p5607_p13 = scmp.lt.s32.totalorder %s95_s23, %s95_s23 }
  0x56   :  { %p5603_p12 = scmp.ne.s32.totalorder %s95_s23, %s5602_s29  ;;  %p5608_p0 = scmp.lt.s32.totalorder %s5602_s29, %s5602_s29 }
  0x58   :  { %p5609_p1 = por %p5608_p0, %p5607_p13 }
  0x5a   :  { %p5610_p2 = pnand %p5609_p1, %p5603_p12 }
  0x5c   :  { %5613 = shalt.err (!%p5610_p2)
}
  0x5d   :  { %100 = dma.hbm_to_vmem [thread:$0]  %s6597_s10, 2048, %s95_s23, [#allocation10], %s5640_s15, %s5640_s15, %s5641_s16  }
  0x5e   :  { %5622 = dma.done.wait [#allocation4], 16  }
  0x5f   :  { %5623 = vsyncadd [#allocation4], 4294967280 }
  0x60   :  { %5624 = dma.done.wait [#allocation3], 2048  }
  0x61   :  { %5625 = vsyncadd [#allocation3], 4294965248 }
  0x62   :  { %5626 = dma.done.wait [#allocation7], 4096  }
  0x63   :  { %5627 = vsyncadd [#allocation7], 4294963200 }
  0x64   :  { %5628 = dma.done.wait [#allocation10], 4096  }
  0x65   :  { %5629 = vsyncadd [#allocation10], 4294963200 }
  0x66   :  { %121 = sfence }
  0x67   :  { %v5802_v0 = vmov 0.0   ;;  %s5804_s30 = smov 1  }
  0x68 LB: > { %v134_v1 = vld [vmem:[#allocation8] sm:$0xff]  ;;  %v135_v2 = vld [vmem:[#allocation8 + $0x8] sm:$0xff]  ;;  %v136_v3 = vld [vmem:[#allocation8 + $0x10] sm:$0xff]  ;;  %v5646_v4 = vmov 0.0|0.0   ;;  %vm5647_vm0 = vmmov 0   ;;  %v5648_v7 = vmov 0.0   ;;  %s2481_s28 = scalar_lea.vmem %s6588_s1, %s5636_s30  ;;  %s5636_s30 = sphi %s5804_s30, %s127_s30   ;;  %v5632_v0 = vphi %v5802_v0, %v6600_v0  }
  0x69   : > { %4586 = vmatprep.subr.bf16.mxu0 %v5646_v4  ;;  %v5813_v5 = vpack.c.bf16 %v135_v2, %v134_v1  ;;  %v137_v6 = vld [vmem:[#allocation8 + $0x18] sm:$0xff]  ;;  %3393 = vmatprep.mubr.msk.f32.mxu0 %vm5647_vm0, %v5648_v7  ;;  %v138_v9 = vld [vmem:[#allocation8 + $0x20] sm:$0xff]  ;;  %v139_v10 = vld [vmem:[#allocation8 + $0x28] sm:$0xff]  ;;  %s2765_s16 = sadd.s32 4294967295, %s5636_s30  ;;  %s129_s13 = sld [smem:[#allocation2 + %s5636_s30]] }
  0x6a   : > { %4610 = vmatprep.subr.bf16.mxu1 %v5646_v4  ;;  %3428 = vmatprep.mubr.msk.f32.mxu1 %vm5647_vm0, %v5648_v7  ;;  %v5821_v8 = vpack.c.bf16 %v137_v6, %v136_v3  ;;  %v222_v11 = vld [vmem:[#allocation9] sm:$0xff]  ;;  %v223_v12 = vld [vmem:[#allocation9 + $0x8] sm:$0xff]  ;;  %v224_v14 = vld [vmem:[#allocation9 + $0x10] sm:$0xff]  ;;  %v5827_v16 = vpack.c.bf16 %v139_v10, %v138_v9  ;;  %s131_s14 = sld [smem:[#allocation2 + %s2765_s16]]  ;;  %s127_s30 = sadd.s32 1, %s5636_s30  }
  0x6b   : > { %4588 = vmatpush3.bf16.msra.mxu0 %v5813_v5  ;;  %v5824_v13 = vpack.c.bf16 %v223_v12, %v222_v11  ;;  %v225_v15 = vld [vmem:[#allocation9 + $0x18] sm:$0xff]  ;;  %v140_v17 = vld [vmem:[#allocation8 + $0x30] sm:$0xff]  ;;  %v226_v20 = vld [vmem:[#allocation9 + $0x20] sm:$0xff]  ;;  %p124_p3 = scmp.ge.s32.totalorder %s127_s30, 8  }
  0x6c   : > { %4589 = vmatprep.subr.bf16.mxu0 %v5646_v4  ;;  %v141_v18 = vld [vmem:[#allocation8 + $0x38] sm:$0xff]  ;;  %v5831_v19 = vpack.c.bf16 %v225_v15, %v224_v14  ;;  %v227_v21 = vld [vmem:[#allocation9 + $0x28] sm:$0xff]  ;;  %v142_v23 = vld [vmem:[#allocation8 + $0x40] sm:$0xff]  ;;  %vm5650_vm1 = vmmov (%p124_p3), 0  }
  0x6d   : > { %4612 = vmatpush3.bf16.msra.mxu1 %v5824_v13  ;;  %v5835_v22 = vpack.c.bf16 %v141_v18, %v140_v17  ;;  %v143_v24 = vld [vmem:[#allocation8 + $0x48] sm:$0xff]  ;;  %v5839_v25 = vpack.c.bf16 %v227_v21, %v226_v20  ;;  %v228_v26 = vld [vmem:[#allocation9 + $0x30] sm:$0xff]  ;;  %v229_v27 = vld [vmem:[#allocation9 + $0x38] sm:$0xff] }
  0x6e   : > { %4613 = vmatprep.subr.bf16.mxu1 %v5646_v4  ;;  %v5843_v28 = vpack.c.bf16 %v143_v24, %v142_v23  ;;  %v144_v29 = vld [vmem:[#allocation8 + $0x50] sm:$0xff]  ;;  %v145_v30 = vld [vmem:[#allocation8 + $0x58] sm:$0xff]  ;;  %v5847_v31 = vpack.c.bf16 %v229_v27, %v228_v26  ;;  %v230_v32 = vld [vmem:[#allocation9 + $0x40] sm:$0xff] }
  0x6f   : > { %4591 = vmatpush3.bf16.msra.mxu0 %v5821_v8  ;;  %v231_v33 = vld [vmem:[#allocation9 + $0x48] sm:$0xff]  ;;  %v5851_v34 = vpack.c.bf16 %v145_v30, %v144_v29  ;;  %v146_v35 = vld [vmem:[#allocation8 + $0x60] sm:$0xff]  ;;  %v148_v39 = vld [vmem:[#allocation8 + $0x70] sm:$0xff] }
  0x70   : > { %4592 = vmatprep.subr.bf16.mxu0 %v5646_v4  ;;  %v147_v36 = vld [vmem:[#allocation8 + $0x68] sm:$0xff]  ;;  %v5855_v37 = vpack.c.bf16 %v231_v33, %v230_v32  ;;  %v149_v40 = vld [vmem:[#allocation8 + $0x78] sm:$0xff]  ;;  %v232_v42 = vld [vmem:[#allocation9 + $0x50] sm:$0xff]  ;;  %s132_s17 = ssub.f32 %s129_s13, %s131_s14 }
  0x71   : > { %4615 = vmatpush3.bf16.msra.mxu1 %v5831_v19  ;;  %v5859_v38 = vpack.c.bf16 %v147_v36, %v146_v35  ;;  %v5865_v41 = vpack.c.bf16 %v149_v40, %v148_v39  ;;  %v233_v43 = vld [vmem:[#allocation9 + $0x58] sm:$0xff]  ;;  %v234_v45 = vld [vmem:[#allocation9 + $0x60] sm:$0xff]  ;;  %v235_v46 = vld [vmem:[#allocation9 + $0x68] sm:$0xff] }
  0x72   : > { %4616 = vmatprep.subr.bf16.mxu1 %v5646_v4  ;;  %v5889_v44 = vpack.c.bf16 %v233_v43, %v232_v42  ;;  %v5893_v47 = vpack.c.bf16 %v235_v46, %v234_v45  ;;  %v236_v48 = vld [vmem:[#allocation9 + $0x70] sm:$0xff]  ;;  %v237_v49 = vld [vmem:[#allocation9 + $0x78] sm:$0xff]  ;;  %v5904_v51 = vld [vmem:[%s6594_s7] sm:$0x1]  ;;  %s5927_s18 = smul.f32 0.25, %s132_s17 }
  0x73   : > { %4594 = vmatpush3.bf16.msra.mxu0 %v5827_v16  ;;  %v5896_v50 = vpack.c.bf16 %v237_v49, %v236_v48  ;;  %v5933_v56 = vld [vmem:[%s6596_s9] sm:$0x1] }
  0x74   : > { %4595 = vmatprep.subr.bf16.mxu0 %v5646_v4  ;;  %s309_s20 = smul.f32 0.5, %s5927_s18  ;;  %v6021_v23 = vstv %s5927_s18 }
  0x75   : > { %4618 = vmatpush3.bf16.msra.mxu1 %v5839_v25  ;;  %s741_s19 = smul.f32 0.16666667, %s5927_s18 }
  0x76   : > { %4619 = vmatprep.subr.bf16.mxu1 %v5646_v4  ;;  %v5935_v58 = vstv %s309_s20 }
  0x77   : > { %4597 = vmatpush3.bf16.msra.mxu0 %v5835_v22  ;;  %v6066_v46 = vstv %s741_s19 }
  0x78   : > { %4598 = vmatprep.subr.bf16.mxu0 %v5646_v4 }
  0x79   : > { %4621 = vmatpush3.bf16.msra.mxu1 %v5847_v31 }
  0x7a   : > { %4622 = vmatprep.subr.bf16.mxu1 %v5646_v4 }
  0x7b   : > { %4600 = vmatpush3.bf16.msra.mxu0 %v5843_v28 }
  0x7c   : > { %4601 = vmatprep.subr.bf16.mxu0 %v5646_v4 }
  0x7d   : > { %4624 = vmatpush3.bf16.msra.mxu1 %v5855_v37 }
  0x7e   : > { %4625 = vmatprep.subr.bf16.mxu1 %v5646_v4 }
  0x7f   : > { %4603 = vmatpush3.bf16.msra.mxu0 %v5851_v34 }
  0x80   : > { %4604 = vmatprep.subr.bf16.mxu0 %v5646_v4 }
  0x81   : > { %4627 = vmatpush3.bf16.msra.mxu1 %v5889_v44 }
  0x82   : > { %4628 = vmatprep.subr.bf16.mxu1 %v5646_v4 }
  0x83   : > { %4606 = vmatpush3.bf16.msra.mxu0 %v5859_v38 }
  0x84   : > { %4607 = vmatprep.subr.bf16.mxu0 %v5646_v4 }
  0x85   : > { %4630 = vmatpush3.bf16.msra.mxu1 %v5893_v47 }
  0x86   : > { %4631 = vmatprep.subr.bf16.mxu1 %v5646_v4 }
  0x87   : > { %4609 = vmatpush3.bf16.msra.mxu0 %v5865_v41 }
  0x88   : > { %4634 = vmatprep.subr.bf16.mxu0 %v5646_v4 }
  0x89   : > { %4633 = vmatpush3.bf16.msra.mxu1 %v5896_v50 }
  0x8a   : > { %3394 = vmatmul.mubr.f32.vlgmr.msra.gmra.mrb[0].mxu0 %v5632_v0  ;;  %4658 = vmatprep.subr.bf16.mxu1 %v5646_v4 }
  0x8b   : > { %4636 = vmatpush3.bf16.msra.mxu0 %v5813_v5  ;;  %3463 = vmatprep.mubr.msk.f32.mxu0 %vm5647_vm0, %v5648_v7 }
  0x8c   : > { %4637 = vmatprep.subr.bf16.mxu0 %v5646_v4 }
  0x8f   : > { %4639 = vmatpush3.bf16.msra.mxu0 %v5821_v8 }
  0x90   : > { %4640 = vmatprep.subr.bf16.mxu0 %v5646_v4 }
  0x93   : > { %4642 = vmatpush3.bf16.msra.mxu0 %v5827_v16 }
  0x94   : > { %4643 = vmatprep.subr.bf16.mxu0 %v5646_v4 }
  0x97   : > { %4645 = vmatpush3.bf16.msra.mxu0 %v5835_v22 }
  0x98   : > { %4646 = vmatprep.subr.bf16.mxu0 %v5646_v4 }
  0x9b   : > { %4648 = vmatpush3.bf16.msra.mxu0 %v5843_v28 }
  0x9c   : > { %4649 = vmatprep.subr.bf16.mxu0 %v5646_v4 }
  0x9f   : > { %4651 = vmatpush3.bf16.msra.mxu0 %v5851_v34 }
  0xa0   : > { %4652 = vmatprep.subr.bf16.mxu0 %v5646_v4 }
  0xa3   : > { %4654 = vmatpush3.bf16.msra.mxu0 %v5859_v38 }
  0xa4   : > { %4655 = vmatprep.subr.bf16.mxu0 %v5646_v4 }
  0xa7   : > { %4657 = vmatpush3.bf16.msra.mxu0 %v5865_v41 }
  0xa8   : > { %4682 = vmatprep.subr.bf16.mxu0 %v5646_v4 }
 0x15d   : > { %v217_v52 = vpop.f32.mrb[0].mxu0 }
 0x15e   : > { %v218_v53 = vadd.f32 %v217_v52, %v5904_v51  ;;  %v3395_v54 = vpop.f32.mrb[1].mxu0 }
 0x160   : > { %5456 = vtanh.f32 %v218_v53 }
 0x16a   : > { %v5457_v55 = vpop.eup %5456 }
 0x16b   : > { %3429 = vmatmul.mubr.f32.vlgmr.msra.gmra.mrb[0].mxu1 %v5457_v55 }
 0x16c   : > { %4660 = vmatpush3.bf16.msra.mxu1 %v5824_v13  ;;  %3498 = vmatprep.mubr.msk.f32.mxu1 %vm5647_vm0, %v5648_v7 }
 0x16d   : > { %4661 = vmatprep.subr.bf16.mxu1 %v5646_v4 }
 0x170   : > { %4663 = vmatpush3.bf16.msra.mxu1 %v5831_v19 }
 0x171   : > { %4664 = vmatprep.subr.bf16.mxu1 %v5646_v4 }
 0x174   : > { %4666 = vmatpush3.bf16.msra.mxu1 %v5839_v25 }
 0x175   : > { %4667 = vmatprep.subr.bf16.mxu1 %v5646_v4 }
 0x178   : > { %4669 = vmatpush3.bf16.msra.mxu1 %v5847_v31 }
 0x179   : > { %4670 = vmatprep.subr.bf16.mxu1 %v5646_v4 }
 0x17c   : > { %4672 = vmatpush3.bf16.msra.mxu1 %v5855_v37 }
 0x17d   : > { %4673 = vmatprep.subr.bf16.mxu1 %v5646_v4 }
 0x180   : > { %4675 = vmatpush3.bf16.msra.mxu1 %v5889_v44 }
 0x181   : > { %4676 = vmatprep.subr.bf16.mxu1 %v5646_v4 }
 0x184   : > { %4678 = vmatpush3.bf16.msra.mxu1 %v5893_v47 }
 0x185   : > { %4679 = vmatprep.subr.bf16.mxu1 %v5646_v4 }
 0x188   : > { %4681 = vmatpush3.bf16.msra.mxu1 %v5896_v50 }
 0x189   : > { %4706 = vmatprep.subr.bf16.mxu1 %v5646_v4 }
 0x23e   : > { %v305_v57 = vpop.f32.mrb[0].mxu1 }
 0x23f   : > { %v5938_v59 = vadd.f32 %v305_v57, %v5933_v56  ;;  %v3430_v60 = vpop.f32.mrb[1].mxu1 }
 0x241   : > { %v311_v61 = vmul.f32 %v5935_v58, %v5938_v59 }
 0x243   : > { %v312_v62 = vadd.f32 %v5632_v0, %v311_v61 }
 0x245   : > { %3464 = vmatmul.mubr.f32.vlgmr.msra.gmra.mrb[2].mxu0 %v312_v62 }
 0x246   : > { %4684 = vmatpush3.bf16.msra.mxu0 %v5813_v5  ;;  %3533 = vmatprep.mubr.msk.f32.mxu0 %vm5647_vm0, %v5648_v7 }
 0x247   : > { %4685 = vmatprep.subr.bf16.mxu0 %v5646_v4 }
 0x24a   : > { %4687 = vmatpush3.bf16.msra.mxu0 %v5821_v8 }
 0x24b   : > { %4688 = vmatprep.subr.bf16.mxu0 %v5646_v4 }
 0x24e   : > { %4690 = vmatpush3.bf16.msra.mxu0 %v5827_v16 }
 0x24f   : > { %4691 = vmatprep.subr.bf16.mxu0 %v5646_v4 }
 0x252   : > { %4693 = vmatpush3.bf16.msra.mxu0 %v5835_v22 }
 0x253   : > { %4694 = vmatprep.subr.bf16.mxu0 %v5646_v4 }
 0x256   : > { %4696 = vmatpush3.bf16.msra.mxu0 %v5843_v28 }
 0x257   : > { %4697 = vmatprep.subr.bf16.mxu0 %v5646_v4 }
 0x25a   : > { %4699 = vmatpush3.bf16.msra.mxu0 %v5851_v34 }
 0x25b   : > { %4700 = vmatprep.subr.bf16.mxu0 %v5646_v4 }
 0x25e   : > { %4702 = vmatpush3.bf16.msra.mxu0 %v5859_v38 }
 0x25f   : > { %4703 = vmatprep.subr.bf16.mxu0 %v5646_v4 }
 0x262   : > { %4705 = vmatpush3.bf16.msra.mxu0 %v5865_v41 }
 0x263   : > { %4730 = vmatprep.subr.bf16.mxu0 %v5646_v4 }
 0x318   : > { %v379_v63 = vpop.f32.mrb[2].mxu0 }
 0x319   : > { %v380_v1 = vadd.f32 %v379_v63, %v5904_v51  ;;  %v3465_v2 = vpop.f32.mrb[3].mxu0 }
 0x31b   : > { %5458 = vtanh.f32 %v380_v1 }
 0x325   : > { %v5459_v3 = vpop.eup %5458 }
 0x326   : > { %3499 = vmatmul.mubr.f32.vlgmr.msra.gmra.mrb[2].mxu1 %v5459_v3 }
 0x327   : > { %4708 = vmatpush3.bf16.msra.mxu1 %v5824_v13  ;;  %3568 = vmatprep.mubr.msk.f32.mxu1 %vm5647_vm0, %v5648_v7 }
 0x328   : > { %4709 = vmatprep.subr.bf16.mxu1 %v5646_v4 }
 0x32b   : > { %4711 = vmatpush3.bf16.msra.mxu1 %v5831_v19 }
 0x32c   : > { %4712 = vmatprep.subr.bf16.mxu1 %v5646_v4 }
 0x32f   : > { %4714 = vmatpush3.bf16.msra.mxu1 %v5839_v25 }
 0x330   : > { %4715 = vmatprep.subr.bf16.mxu1 %v5646_v4 }
 0x333   : > { %4717 = vmatpush3.bf16.msra.mxu1 %v5847_v31 }
 0x334   : > { %4718 = vmatprep.subr.bf16.mxu1 %v5646_v4 }
 0x337   : > { %4720 = vmatpush3.bf16.msra.mxu1 %v5855_v37 }
 0x338   : > { %4721 = vmatprep.subr.bf16.mxu1 %v5646_v4 }
 0x33b   : > { %4723 = vmatpush3.bf16.msra.mxu1 %v5889_v44 }
 0x33c   : > { %4724 = vmatprep.subr.bf16.mxu1 %v5646_v4 }
 0x33f   : > { %4726 = vmatpush3.bf16.msra.mxu1 %v5893_v47 }
 0x340   : > { %4727 = vmatprep.subr.bf16.mxu1 %v5646_v4 }
 0x343   : > { %4729 = vmatpush3.bf16.msra.mxu1 %v5896_v50 }
 0x344   : > { %4754 = vmatprep.subr.bf16.mxu1 %v5646_v4 }
 0x3f9   : > { %v450_v6 = vpop.f32.mrb[2].mxu1 }
 0x3fa   : > { %v451_v9 = vadd.f32 %v450_v6, %v5933_v56  ;;  %v3500_v10 = vpop.f32.mrb[3].mxu1 }
 0x3fc   : > { %v454_v11 = vmul.f32 %v451_v9, %v5935_v58  ;;  %v742_v20 = vmul.f32 2.0, %v451_v9 }
 0x3fe   : > { %v455_v12 = vadd.f32 %v5632_v0, %v454_v11  ;;  %v743_v27 = vadd.f32 %v742_v20, %v5938_v59 }
 0x400   : > { %3534 = vmatmul.mubr.f32.vlgmr.msra.gmra.mrb[4].mxu0 %v455_v12 }
 0x401   : > { %4732 = vmatpush3.bf16.msra.mxu0 %v5813_v5  ;;  %3603 = vmatprep.mubr.msk.f32.mxu0 %vm5647_vm0, %v5648_v7 }
 0x402   : > { %4733 = vmatprep.subr.bf16.mxu0 %v5646_v4 }
 0x405   : > { %4735 = vmatpush3.bf16.msra.mxu0 %v5821_v8 }
 0x406   : > { %4736 = vmatprep.subr.bf16.mxu0 %v5646_v4 }
 0x409   : > { %4738 = vmatpush3.bf16.msra.mxu0 %v5827_v16 }
 0x40a   : > { %4739 = vmatprep.subr.bf16.mxu0 %v5646_v4 }
 0x40d   : > { %4741 = vmatpush3.bf16.msra.mxu0 %v5835_v22 }
 0x40e   : > { %4742 = vmatprep.subr.bf16.mxu0 %v5646_v4 }
 0x411   : > { %4744 = vmatpush3.bf16.msra.mxu0 %v5843_v28 }
 0x412   : > { %4745 = vmatprep.subr.bf16.mxu0 %v5646_v4 }
 0x415   : > { %4747 = vmatpush3.bf16.msra.mxu0 %v5851_v34 }
 0x416   : > { %4748 = vmatprep.subr.bf16.mxu0 %v5646_v4 }
 0x419   : > { %4750 = vmatpush3.bf16.msra.mxu0 %v5859_v38 }
 0x41a   : > { %4751 = vmatprep.subr.bf16.mxu0 %v5646_v4 }
 0x41d   : > { %4753 = vmatpush3.bf16.msra.mxu0 %v5865_v41 }
 0x41e   : > { %4778 = vmatprep.subr.bf16.mxu0 %v5646_v4 }
 0x4d3   : > { %v522_v14 = vpop.f32.mrb[4].mxu0 }
 0x4d4   : > { %v523_v15 = vadd.f32 %v522_v14, %v5904_v51  ;;  %v3535_v17 = vpop.f32.mrb[5].mxu0 }
 0x4d6   : > { %5460 = vtanh.f32 %v523_v15 }
 0x4e0   : > { %v5461_v18 = vpop.eup %5460 }
 0x4e1   : > { %3569 = vmatmul.mubr.f32.vlgmr.msra.gmra.mrb[4].mxu1 %v5461_v18 }
 0x4e2   : > { %4756 = vmatpush3.bf16.msra.mxu1 %v5824_v13  ;;  %3638 = vmatprep.mubr.msk.f32.mxu1 %vm5647_vm0, %v5648_v7 }
 0x4e3   : > { %4757 = vmatprep.subr.bf16.mxu1 %v5646_v4 }
 0x4e6   : > { %4759 = vmatpush3.bf16.msra.mxu1 %v5831_v19 }
 0x4e7   : > { %4760 = vmatprep.subr.bf16.mxu1 %v5646_v4 }
 0x4ea   : > { %4762 = vmatpush3.bf16.msra.mxu1 %v5839_v25 }
 0x4eb   : > { %4763 = vmatprep.subr.bf16.mxu1 %v5646_v4 }
 0x4ee   : > { %4765 = vmatpush3.bf16.msra.mxu1 %v5847_v31 }
 0x4ef   : > { %4766 = vmatprep.subr.bf16.mxu1 %v5646_v4 }
 0x4f2   : > { %4768 = vmatpush3.bf16.msra.mxu1 %v5855_v37 }
 0x4f3   : > { %4769 = vmatprep.subr.bf16.mxu1 %v5646_v4 }
 0x4f6   : > { %4771 = vmatpush3.bf16.msra.mxu1 %v5889_v44 }
 0x4f7   : > { %4772 = vmatprep.subr.bf16.mxu1 %v5646_v4 }
 0x4fa   : > { %4774 = vmatpush3.bf16.msra.mxu1 %v5893_v47 }
 0x4fb   : > { %4775 = vmatprep.subr.bf16.mxu1 %v5646_v4 }
 0x4fe   : > { %4777 = vmatpush3.bf16.msra.mxu1 %v5896_v50 }
 0x4ff   : > { %4802 = vmatprep.subr.bf16.mxu1 %v5646_v4 }
 0x5b4   : > { %v593_v21 = vpop.f32.mrb[4].mxu1 }
 0x5b5   : > { %v594_v24 = vadd.f32 %v593_v21, %v5933_v56  ;;  %v3570_v26 = vpop.f32.mrb[5].mxu1 }
 0x5b7   : > { %v598_v29 = vmul.f32 %v6021_v23, %v594_v24  ;;  %v744_v30 = vmul.f32 2.0, %v594_v24 }
 0x5b9   : > { %v599_v32 = vadd.f32 %v5632_v0, %v598_v29  ;;  %v745_v33 = vadd.f32 %v744_v30, %v743_v27 }
 0x5bb   : > { %3604 = vmatmul.mubr.f32.vlgmr.msra.gmra.mrb[6].mxu0 %v599_v32 }
 0x5bc   : > { %4780 = vmatpush3.bf16.msra.mxu0 %v5813_v5  ;;  %3673 = vmatprep.mubr.msk.f32.mxu0 %vm5647_vm0, %v5648_v7 }
 0x5bd   : > { %4781 = vmatprep.subr.bf16.mxu0 %v5646_v4 }
 0x5c0   : > { %4783 = vmatpush3.bf16.msra.mxu0 %v5821_v8 }
 0x5c1   : > { %4784 = vmatprep.subr.bf16.mxu0 %v5646_v4 }
 0x5c4   : > { %4786 = vmatpush3.bf16.msra.mxu0 %v5827_v16 }
 0x5c5   : > { %4787 = vmatprep.subr.bf16.mxu0 %v5646_v4 }
 0x5c8   : > { %4789 = vmatpush3.bf16.msra.mxu0 %v5835_v22 }
 0x5c9   : > { %4790 = vmatprep.subr.bf16.mxu0 %v5646_v4 }
 0x5cc   : > { %4792 = vmatpush3.bf16.msra.mxu0 %v5843_v28 }
 0x5cd   : > { %4793 = vmatprep.subr.bf16.mxu0 %v5646_v4 }
 0x5d0   : > { %4795 = vmatpush3.bf16.msra.mxu0 %v5851_v34 }
 0x5d1   : > { %4796 = vmatprep.subr.bf16.mxu0 %v5646_v4 }
 0x5d4   : > { %4798 = vmatpush3.bf16.msra.mxu0 %v5859_v38 }
 0x5d5   : > { %4799 = vmatprep.subr.bf16.mxu0 %v5646_v4 }
 0x5d8   : > { %4801 = vmatpush3.bf16.msra.mxu0 %v5865_v41 }
 0x5d9   : > { %4826 = vmatprep.subr.bf16.mxu0 %v5646_v4 }
 0x68e   : > { %v666_v35 = vpop.f32.mrb[6].mxu0 }
 0x68f   : > { %v667_v36 = vadd.f32 %v666_v35, %v5904_v51  ;;  %v3605_v39 = vpop.f32.mrb[7].mxu0 }
 0x691   : > { %5462 = vtanh.f32 %v667_v36 }
 0x69b   : > { %v5463_v40 = vpop.eup %5462 }
 0x69c   : > { %3639 = vmatmul.mubr.f32.vlgmr.msra.gmra.mrb[6].mxu1 %v5463_v40 }
 0x69d   : > { %4804 = vmatpush3.bf16.msra.mxu1 %v5824_v13  ;;  %3708 = vmatprep.mubr.msk.f32.mxu1 %vm5647_vm0, %v5648_v7 }
 0x69e   : > { %4805 = vmatprep.subr.bf16.mxu1 %v5646_v4 }
 0x6a1   : > { %4807 = vmatpush3.bf16.msra.mxu1 %v5831_v19 }
 0x6a2   : > { %4808 = vmatprep.subr.bf16.mxu1 %v5646_v4 }
 0x6a5   : > { %4810 = vmatpush3.bf16.msra.mxu1 %v5839_v25 }
 0x6a6   : > { %4811 = vmatprep.subr.bf16.mxu1 %v5646_v4 }
 0x6a9   : > { %4813 = vmatpush3.bf16.msra.mxu1 %v5847_v31 }
 0x6aa   : > { %4814 = vmatprep.subr.bf16.mxu1 %v5646_v4 }
 0x6ad   : > { %4816 = vmatpush3.bf16.msra.mxu1 %v5855_v37 }
 0x6ae   : > { %4817 = vmatprep.subr.bf16.mxu1 %v5646_v4 }
 0x6b1   : > { %4819 = vmatpush3.bf16.msra.mxu1 %v5889_v44 }
 0x6b2   : > { %4820 = vmatprep.subr.bf16.mxu1 %v5646_v4 }
 0x6b5   : > { %4822 = vmatpush3.bf16.msra.mxu1 %v5893_v47 }
 0x6b6   : > { %4823 = vmatprep.subr.bf16.mxu1 %v5646_v4 }
 0x6b9   : > { %4825 = vmatpush3.bf16.msra.mxu1 %v5896_v50 }
 0x6ba   : > { %4850 = vmatprep.subr.bf16.mxu1 %v5646_v4 }
 0x76f   : > { %v737_v42 = vpop.f32.mrb[6].mxu1 }
 0x770   : > { %v738_v43 = vadd.f32 %v737_v42, %v5933_v56  ;;  %v3640_v45 = vpop.f32.mrb[7].mxu1 }
 0x772   : > { %v746_v48 = vadd.f32 %v745_v33, %v738_v43 }
 0x774   : > { %v748_v49 = vmul.f32 %v6066_v46, %v746_v48 }
 0x776   : > { %v6070_v52 = vadd.f32 %v5632_v0, %v748_v49 }
 0x778   : > { %3674 = vmatmul.mubr.f32.vlgmr.msra.gmra.mrb[8].mxu0 %v6070_v52 }
 0x779   : > { %4828 = vmatpush3.bf16.msra.mxu0 %v5813_v5  ;;  %3743 = vmatprep.mubr.msk.f32.mxu0 %vm5647_vm0, %v5648_v7 }
 0x77a   : > { %4829 = vmatprep.subr.bf16.mxu0 %v5646_v4 }
 0x77d   : > { %4831 = vmatpush3.bf16.msra.mxu0 %v5821_v8 }
 0x77e   : > { %4832 = vmatprep.subr.bf16.mxu0 %v5646_v4 }
 0x781   : > { %4834 = vmatpush3.bf16.msra.mxu0 %v5827_v16 }
 0x782   : > { %4835 = vmatprep.subr.bf16.mxu0 %v5646_v4 }
 0x785   : > { %4837 = vmatpush3.bf16.msra.mxu0 %v5835_v22 }
 0x786   : > { %4838 = vmatprep.subr.bf16.mxu0 %v5646_v4 }
 0x789   : > { %4840 = vmatpush3.bf16.msra.mxu0 %v5843_v28 }
 0x78a   : > { %4841 = vmatprep.subr.bf16.mxu0 %v5646_v4 }
 0x78d   : > { %4843 = vmatpush3.bf16.msra.mxu0 %v5851_v34 }
 0x78e   : > { %4844 = vmatprep.subr.bf16.mxu0 %v5646_v4 }
 0x791   : > { %4846 = vmatpush3.bf16.msra.mxu0 %v5859_v38 }
 0x792   : > { %4847 = vmatprep.subr.bf16.mxu0 %v5646_v4 }
 0x795   : > { %4849 = vmatpush3.bf16.msra.mxu0 %v5865_v41 }
 0x796   : > { %4874 = vmatprep.subr.bf16.mxu0 %v5646_v4 }
 0x84b   : > { %v816_v0 = vpop.f32.mrb[8].mxu0 }
 0x84c   : > { %v817_v53 = vadd.f32 %v816_v0, %v5904_v51  ;;  %v3675_v54 = vpop.f32.mrb[9].mxu0 }
 0x84e   : > { %5464 = vtanh.f32 %v817_v53 }
 0x858   : > { %v5465_v55 = vpop.eup %5464 }
 0x859   : > { %3709 = vmatmul.mubr.f32.vlgmr.msra.gmra.mrb[8].mxu1 %v5465_v55 }
 0x85a   : > { %4852 = vmatpush3.bf16.msra.mxu1 %v5824_v13  ;;  %3778 = vmatprep.mubr.msk.f32.mxu1 %vm5647_vm0, %v5648_v7 }
 0x85b   : > { %4853 = vmatprep.subr.bf16.mxu1 %v5646_v4 }
 0x85e   : > { %4855 = vmatpush3.bf16.msra.mxu1 %v5831_v19 }
 0x85f   : > { %4856 = vmatprep.subr.bf16.mxu1 %v5646_v4 }
 0x862   : > { %4858 = vmatpush3.bf16.msra.mxu1 %v5839_v25 }
 0x863   : > { %4859 = vmatprep.subr.bf16.mxu1 %v5646_v4 }
 0x866   : > { %4861 = vmatpush3.bf16.msra.mxu1 %v5847_v31 }
 0x867   : > { %4862 = vmatprep.subr.bf16.mxu1 %v5646_v4 }
 0x86a   : > { %4864 = vmatpush3.bf16.msra.mxu1 %v5855_v37 }
 0x86b   : > { %4865 = vmatprep.subr.bf16.mxu1 %v5646_v4 }
 0x86e   : > { %4867 = vmatpush3.bf16.msra.mxu1 %v5889_v44 }
 0x86f   : > { %4868 = vmatprep.subr.bf16.mxu1 %v5646_v4 }
 0x872   : > { %4870 = vmatpush3.bf16.msra.mxu1 %v5893_v47 }
 0x873   : > { %4871 = vmatprep.subr.bf16.mxu1 %v5646_v4 }
 0x876   : > { %4873 = vmatpush3.bf16.msra.mxu1 %v5896_v50 }
 0x877   : > { %4898 = vmatprep.subr.bf16.mxu1 %v5646_v4 }
 0x92c   : > { %v887_v57 = vpop.f32.mrb[8].mxu1 }
 0x92d   : > { %v6111_v59 = vadd.f32 %v887_v57, %v5933_v56  ;;  %v3710_v60 = vpop.f32.mrb[9].mxu1 }
 0x92f   : > { %v891_v61 = vmul.f32 %v6111_v59, %v5935_v58 }
 0x931   : > { %v892_v62 = vadd.f32 %v891_v61, %v6070_v52 }
 0x933   : > { %3744 = vmatmul.mubr.f32.vlgmr.msra.gmra.mrb[10].mxu0 %v892_v62 }
 0x934   : > { %4876 = vmatpush3.bf16.msra.mxu0 %v5813_v5  ;;  %3813 = vmatprep.mubr.msk.f32.mxu0 %vm5647_vm0, %v5648_v7 }
 0x935   : > { %4877 = vmatprep.subr.bf16.mxu0 %v5646_v4 }
 0x938   : > { %4879 = vmatpush3.bf16.msra.mxu0 %v5821_v8 }
 0x939   : > { %4880 = vmatprep.subr.bf16.mxu0 %v5646_v4 }
 0x93c   : > { %4882 = vmatpush3.bf16.msra.mxu0 %v5827_v16 }
 0x93d   : > { %4883 = vmatprep.subr.bf16.mxu0 %v5646_v4 }
 0x940   : > { %4885 = vmatpush3.bf16.msra.mxu0 %v5835_v22 }
 0x941   : > { %4886 = vmatprep.subr.bf16.mxu0 %v5646_v4 }
 0x944   : > { %4888 = vmatpush3.bf16.msra.mxu0 %v5843_v28 }
 0x945   : > { %4889 = vmatprep.subr.bf16.mxu0 %v5646_v4 }
 0x948   : > { %4891 = vmatpush3.bf16.msra.mxu0 %v5851_v34 }
 0x949   : > { %4892 = vmatprep.subr.bf16.mxu0 %v5646_v4 }
 0x94c   : > { %4894 = vmatpush3.bf16.msra.mxu0 %v5859_v38 }
 0x94d   : > { %4895 = vmatprep.subr.bf16.mxu0 %v5646_v4 }
 0x950   : > { %4897 = vmatpush3.bf16.msra.mxu0 %v5865_v41 }
 0x951   : > { %4922 = vmatprep.subr.bf16.mxu0 %v5646_v4 }
 0xa06   : > { %v959_v63 = vpop.f32.mrb[10].mxu0 }
 0xa07   : > { %v960_v1 = vadd.f32 %v959_v63, %v5904_v51  ;;  %v3745_v2 = vpop.f32.mrb[11].mxu0 }
 0xa09   : > { %5466 = vtanh.f32 %v960_v1 }
 0xa13   : > { %v5467_v3 = vpop.eup %5466 }
 0xa14   : > { %3779 = vmatmul.mubr.f32.vlgmr.msra.gmra.mrb[10].mxu1 %v5467_v3 }
 0xa15   : > { %4900 = vmatpush3.bf16.msra.mxu1 %v5824_v13  ;;  %3848 = vmatprep.mubr.msk.f32.mxu1 %vm5647_vm0, %v5648_v7 }
 0xa16   : > { %4901 = vmatprep.subr.bf16.mxu1 %v5646_v4 }
 0xa19   : > { %4903 = vmatpush3.bf16.msra.mxu1 %v5831_v19 }
 0xa1a   : > { %4904 = vmatprep.subr.bf16.mxu1 %v5646_v4 }
 0xa1d   : > { %4906 = vmatpush3.bf16.msra.mxu1 %v5839_v25 }
 0xa1e   : > { %4907 = vmatprep.subr.bf16.mxu1 %v5646_v4 }
 0xa21   : > { %4909 = vmatpush3.bf16.msra.mxu1 %v5847_v31 }
 0xa22   : > { %4910 = vmatprep.subr.bf16.mxu1 %v5646_v4 }
 0xa25   : > { %4912 = vmatpush3.bf16.msra.mxu1 %v5855_v37 }
 0xa26   : > { %4913 = vmatprep.subr.bf16.mxu1 %v5646_v4 }
 0xa29   : > { %4915 = vmatpush3.bf16.msra.mxu1 %v5889_v44 }
 0xa2a   : > { %4916 = vmatprep.subr.bf16.mxu1 %v5646_v4 }
 0xa2d   : > { %4918 = vmatpush3.bf16.msra.mxu1 %v5893_v47 }
 0xa2e   : > { %4919 = vmatprep.subr.bf16.mxu1 %v5646_v4 }
 0xa31   : > { %4921 = vmatpush3.bf16.msra.mxu1 %v5896_v50 }
 0xa32   : > { %4946 = vmatprep.subr.bf16.mxu1 %v5646_v4 }
 0xae7   : > { %v1030_v6 = vpop.f32.mrb[10].mxu1 }
 0xae8   : > { %v1031_v9 = vadd.f32 %v1030_v6, %v5933_v56  ;;  %v3780_v10 = vpop.f32.mrb[11].mxu1 }
 0xaea   : > { %v1034_v11 = vmul.f32 %v1031_v9, %v5935_v58  ;;  %v1320_v20 = vmul.f32 2.0, %v1031_v9 }
 0xaec   : > { %v1035_v12 = vadd.f32 %v1034_v11, %v6070_v52  ;;  %v1321_v27 = vadd.f32 %v1320_v20, %v6111_v59 }
 0xaee   : > { %3814 = vmatmul.mubr.f32.vlgmr.msra.gmra.mrb[12].mxu0 %v1035_v12 }
 0xaef   : > { %4924 = vmatpush3.bf16.msra.mxu0 %v5813_v5  ;;  %3883 = vmatprep.mubr.msk.f32.mxu0 %vm5647_vm0, %v5648_v7 }
 0xaf0   : > { %4925 = vmatprep.subr.bf16.mxu0 %v5646_v4 }
 0xaf3   : > { %4927 = vmatpush3.bf16.msra.mxu0 %v5821_v8 }
 0xaf4   : > { %4928 = vmatprep.subr.bf16.mxu0 %v5646_v4 }
 0xaf7   : > { %4930 = vmatpush3.bf16.msra.mxu0 %v5827_v16 }
 0xaf8   : > { %4931 = vmatprep.subr.bf16.mxu0 %v5646_v4 }
 0xafb   : > { %4933 = vmatpush3.bf16.msra.mxu0 %v5835_v22 }
 0xafc   : > { %4934 = vmatprep.subr.bf16.mxu0 %v5646_v4 }
 0xaff   : > { %4936 = vmatpush3.bf16.msra.mxu0 %v5843_v28 }
 0xb00   : > { %4937 = vmatprep.subr.bf16.mxu0 %v5646_v4 }
 0xb03   : > { %4939 = vmatpush3.bf16.msra.mxu0 %v5851_v34 }
 0xb04   : > { %4940 = vmatprep.subr.bf16.mxu0 %v5646_v4 }
 0xb07   : > { %4942 = vmatpush3.bf16.msra.mxu0 %v5859_v38 }
 0xb08   : > { %4943 = vmatprep.subr.bf16.mxu0 %v5646_v4 }
 0xb0b   : > { %4945 = vmatpush3.bf16.msra.mxu0 %v5865_v41 }
 0xb0c   : > { %4970 = vmatprep.subr.bf16.mxu0 %v5646_v4 }
 0xbc1   : > { %v1102_v14 = vpop.f32.mrb[12].mxu0 }
 0xbc2   : > { %v1103_v15 = vadd.f32 %v1102_v14, %v5904_v51  ;;  %v3815_v17 = vpop.f32.mrb[13].mxu0 }
 0xbc4   : > { %5468 = vtanh.f32 %v1103_v15 }
 0xbce   : > { %v5469_v18 = vpop.eup %5468 }
 0xbcf   : > { %3849 = vmatmul.mubr.f32.vlgmr.msra.gmra.mrb[12].mxu1 %v5469_v18 }
 0xbd0   : > { %4948 = vmatpush3.bf16.msra.mxu1 %v5824_v13  ;;  %3918 = vmatprep.mubr.msk.f32.mxu1 %vm5647_vm0, %v5648_v7 }
 0xbd1   : > { %4949 = vmatprep.subr.bf16.mxu1 %v5646_v4 }
 0xbd4   : > { %4951 = vmatpush3.bf16.msra.mxu1 %v5831_v19 }
 0xbd5   : > { %4952 = vmatprep.subr.bf16.mxu1 %v5646_v4 }
 0xbd8   : > { %4954 = vmatpush3.bf16.msra.mxu1 %v5839_v25 }
 0xbd9   : > { %4955 = vmatprep.subr.bf16.mxu1 %v5646_v4 }
 0xbdc   : > { %4957 = vmatpush3.bf16.msra.mxu1 %v5847_v31 }
 0xbdd   : > { %4958 = vmatprep.subr.bf16.mxu1 %v5646_v4 }
 0xbe0   : > { %4960 = vmatpush3.bf16.msra.mxu1 %v5855_v37 }
 0xbe1   : > { %4961 = vmatprep.subr.bf16.mxu1 %v5646_v4 }
 0xbe4   : > { %4963 = vmatpush3.bf16.msra.mxu1 %v5889_v44 }
 0xbe5   : > { %4964 = vmatprep.subr.bf16.mxu1 %v5646_v4 }
 0xbe8   : > { %4966 = vmatpush3.bf16.msra.mxu1 %v5893_v47 }
 0xbe9   : > { %4967 = vmatprep.subr.bf16.mxu1 %v5646_v4 }
 0xbec   : > { %4969 = vmatpush3.bf16.msra.mxu1 %v5896_v50 }
 0xbed   : > { %4994 = vmatprep.subr.bf16.mxu1 %v5646_v4 }
 0xca2   : > { %v1173_v21 = vpop.f32.mrb[12].mxu1 }
 0xca3   : > { %v1174_v24 = vadd.f32 %v1173_v21, %v5933_v56  ;;  %v3850_v26 = vpop.f32.mrb[13].mxu1 }
 0xca5   : > { %v1177_v29 = vmul.f32 %v1174_v24, %v6021_v23  ;;  %v1322_v30 = vmul.f32 2.0, %v1174_v24 }
 0xca7   : > { %v1178_v32 = vadd.f32 %v1177_v29, %v6070_v52  ;;  %v1323_v33 = vadd.f32 %v1322_v30, %v1321_v27 }
 0xca9   : > { %3884 = vmatmul.mubr.f32.vlgmr.msra.gmra.mrb[14].mxu0 %v1178_v32 }
 0xcaa   : > { %4972 = vmatpush3.bf16.msra.mxu0 %v5813_v5  ;;  %3953 = vmatprep.mubr.msk.f32.mxu0 %vm5647_vm0, %v5648_v7 }
 0xcab   : > { %4973 = vmatprep.subr.bf16.mxu0 %v5646_v4 }
 0xcae   : > { %4975 = vmatpush3.bf16.msra.mxu0 %v5821_v8 }
 0xcaf   : > { %4976 = vmatprep.subr.bf16.mxu0 %v5646_v4 }
 0xcb2   : > { %4978 = vmatpush3.bf16.msra.mxu0 %v5827_v16 }
 0xcb3   : > { %4979 = vmatprep.subr.bf16.mxu0 %v5646_v4 }
 0xcb6   : > { %4981 = vmatpush3.bf16.msra.mxu0 %v5835_v22 }
 0xcb7   : > { %4982 = vmatprep.subr.bf16.mxu0 %v5646_v4 }
 0xcba   : > { %4984 = vmatpush3.bf16.msra.mxu0 %v5843_v28 }
 0xcbb   : > { %4985 = vmatprep.subr.bf16.mxu0 %v5646_v4 }
 0xcbe   : > { %4987 = vmatpush3.bf16.msra.mxu0 %v5851_v34 }
 0xcbf   : > { %4988 = vmatprep.subr.bf16.mxu0 %v5646_v4 }
 0xcc2   : > { %4990 = vmatpush3.bf16.msra.mxu0 %v5859_v38 }
 0xcc3   : > { %4991 = vmatprep.subr.bf16.mxu0 %v5646_v4 }
 0xcc6   : > { %4993 = vmatpush3.bf16.msra.mxu0 %v5865_v41 }
 0xcc7   : > { %5018 = vmatprep.subr.bf16.mxu0 %v5646_v4 }
 0xd7c   : > { %v1245_v35 = vpop.f32.mrb[14].mxu0 }
 0xd7d   : > { %v1246_v36 = vadd.f32 %v1245_v35, %v5904_v51  ;;  %v3885_v39 = vpop.f32.mrb[15].mxu0 }
 0xd7f   : > { %5470 = vtanh.f32 %v1246_v36 }
 0xd89   : > { %v5471_v40 = vpop.eup %5470 }
 0xd8a   : > { %3919 = vmatmul.mubr.f32.vlgmr.msra.gmra.mrb[14].mxu1 %v5471_v40 }
 0xd8b   : > { %4996 = vmatpush3.bf16.msra.mxu1 %v5824_v13  ;;  %3988 = vmatprep.mubr.msk.f32.mxu1 %vm5647_vm0, %v5648_v7 }
 0xd8c   : > { %4997 = vmatprep.subr.bf16.mxu1 %v5646_v4 }
 0xd8f   : > { %4999 = vmatpush3.bf16.msra.mxu1 %v5831_v19 }
 0xd90   : > { %5000 = vmatprep.subr.bf16.mxu1 %v5646_v4 }
 0xd93   : > { %5002 = vmatpush3.bf16.msra.mxu1 %v5839_v25 }
 0xd94   : > { %5003 = vmatprep.subr.bf16.mxu1 %v5646_v4 }
 0xd97   : > { %5005 = vmatpush3.bf16.msra.mxu1 %v5847_v31 }
 0xd98   : > { %5006 = vmatprep.subr.bf16.mxu1 %v5646_v4 }
 0xd9b   : > { %5008 = vmatpush3.bf16.msra.mxu1 %v5855_v37 }
 0xd9c   : > { %5009 = vmatprep.subr.bf16.mxu1 %v5646_v4 }
 0xd9f   : > { %5011 = vmatpush3.bf16.msra.mxu1 %v5889_v44 }
 0xda0   : > { %5012 = vmatprep.subr.bf16.mxu1 %v5646_v4 }
 0xda3   : > { %5014 = vmatpush3.bf16.msra.mxu1 %v5893_v47 }
 0xda4   : > { %5015 = vmatprep.subr.bf16.mxu1 %v5646_v4 }
 0xda7   : > { %5017 = vmatpush3.bf16.msra.mxu1 %v5896_v50 }
 0xda8   : > { %5042 = vmatprep.subr.bf16.mxu1 %v5646_v4 }
 0xe5d   : > { %v1316_v42 = vpop.f32.mrb[14].mxu1 }
 0xe5e   : > { %v1317_v43 = vadd.f32 %v1316_v42, %v5933_v56  ;;  %v3920_v45 = vpop.f32.mrb[15].mxu1  ;;  %v6409_v42 = vld [vmem:[%s6596_s9] sm:$0x1] }
 0xe60   : > { %v1324_v48 = vadd.f32 %v1323_v33, %v1317_v43  ;;  %v6385_v33 = vld [vmem:[%s6594_s7] sm:$0x1] }
 0xe62   : > { %v1325_v49 = vmul.f32 %v1324_v48, %v6066_v46 }
 0xe64   : > { %v6237_v0 = vadd.f32 %v1325_v49, %v6070_v52 }
 0xe66   : > { %3954 = vmatmul.mubr.f32.vlgmr.msra.gmra.mrb[16].mxu0 %v6237_v0 }
 0xe67   : > { %5020 = vmatpush3.bf16.msra.mxu0 %v5813_v5  ;;  %4023 = vmatprep.mubr.msk.f32.mxu0 %vm5647_vm0, %v5648_v7 }
 0xe68   : > { %5021 = vmatprep.subr.bf16.mxu0 %v5646_v4 }
 0xe6b   : > { %5023 = vmatpush3.bf16.msra.mxu0 %v5821_v8 }
 0xe6c   : > { %5024 = vmatprep.subr.bf16.mxu0 %v5646_v4 }
 0xe6f   : > { %5026 = vmatpush3.bf16.msra.mxu0 %v5827_v16 }
 0xe70   : > { %5027 = vmatprep.subr.bf16.mxu0 %v5646_v4 }
 0xe73   : > { %5029 = vmatpush3.bf16.msra.mxu0 %v5835_v22 }
 0xe74   : > { %5030 = vmatprep.subr.bf16.mxu0 %v5646_v4 }
 0xe77   : > { %5032 = vmatpush3.bf16.msra.mxu0 %v5843_v28 }
 0xe78   : > { %5033 = vmatprep.subr.bf16.mxu0 %v5646_v4 }
 0xe7b   : > { %5035 = vmatpush3.bf16.msra.mxu0 %v5851_v34 }
 0xe7c   : > { %5036 = vmatprep.subr.bf16.mxu0 %v5646_v4 }
 0xe7f   : > { %5038 = vmatpush3.bf16.msra.mxu0 %v5859_v38 }
 0xe80   : > { %5039 = vmatprep.subr.bf16.mxu0 %v5646_v4 }
 0xe83   : > { %5041 = vmatpush3.bf16.msra.mxu0 %v5865_v41 }
 0xe84   : > { %5066 = vmatprep.subr.bf16.mxu0 %v5646_v4 }
 0xf39   : > { %v1393_v52 = vpop.f32.mrb[16].mxu0 }
 0xf3a   : > { %v1394_v53 = vadd.f32 %v1393_v52, %v5904_v51  ;;  %v3955_v54 = vpop.f32.mrb[17].mxu0 }
 0xf3c   : > { %5472 = vtanh.f32 %v1394_v53 }
 0xf46   : > { %v5473_v55 = vpop.eup %5472 }
 0xf47   : > { %3989 = vmatmul.mubr.f32.vlgmr.msra.gmra.mrb[16].mxu1 %v5473_v55 }
 0xf48   : > { %5044 = vmatpush3.bf16.msra.mxu1 %v5824_v13  ;;  %4058 = vmatprep.mubr.msk.f32.mxu1 %vm5647_vm0, %v5648_v7 }
 0xf49   : > { %5045 = vmatprep.subr.bf16.mxu1 %v5646_v4 }
 0xf4c   : > { %5047 = vmatpush3.bf16.msra.mxu1 %v5831_v19 }
 0xf4d   : > { %5048 = vmatprep.subr.bf16.mxu1 %v5646_v4 }
 0xf50   : > { %5050 = vmatpush3.bf16.msra.mxu1 %v5839_v25 }
 0xf51   : > { %5051 = vmatprep.subr.bf16.mxu1 %v5646_v4 }
 0xf54   : > { %5053 = vmatpush3.bf16.msra.mxu1 %v5847_v31 }
 0xf55   : > { %5054 = vmatprep.subr.bf16.mxu1 %v5646_v4 }
 0xf58   : > { %5056 = vmatpush3.bf16.msra.mxu1 %v5855_v37 }
 0xf59   : > { %5057 = vmatprep.subr.bf16.mxu1 %v5646_v4 }
 0xf5c   : > { %5059 = vmatpush3.bf16.msra.mxu1 %v5889_v44 }
 0xf5d   : > { %5060 = vmatprep.subr.bf16.mxu1 %v5646_v4 }
 0xf60   : > { %5062 = vmatpush3.bf16.msra.mxu1 %v5893_v47 }
 0xf61   : > { %5063 = vmatprep.subr.bf16.mxu1 %v5646_v4 }
 0xf64   : > { %5065 = vmatpush3.bf16.msra.mxu1 %v5896_v50 }
 0xf65   : > { %5090 = vmatprep.subr.bf16.mxu1 %v5646_v4 }
0x101a   : > { %v1464_v57 = vpop.f32.mrb[16].mxu1 }
0x101b   : > { %v6278_v59 = vadd.f32 %v1464_v57, %v5933_v56  ;;  %v3990_v60 = vpop.f32.mrb[17].mxu1 }
0x101d   : > { %v1468_v61 = vmul.f32 %v6278_v59, %v5935_v58 }
0x101f   : > { %v1469_v62 = vadd.f32 %v1468_v61, %v6237_v0 }
0x1021   : > { %4024 = vmatmul.mubr.f32.vlgmr.msra.gmra.mrb[18].mxu0 %v1469_v62 }
0x1022   : > { %5068 = vmatpush3.bf16.msra.mxu0 %v5813_v5  ;;  %4093 = vmatprep.mubr.msk.f32.mxu0 %vm5647_vm0, %v5648_v7 }
0x1023   : > { %5069 = vmatprep.subr.bf16.mxu0 %v5646_v4 }
0x1026   : > { %5071 = vmatpush3.bf16.msra.mxu0 %v5821_v8 }
0x1027   : > { %5072 = vmatprep.subr.bf16.mxu0 %v5646_v4 }
0x102a   : > { %5074 = vmatpush3.bf16.msra.mxu0 %v5827_v16 }
0x102b   : > { %5075 = vmatprep.subr.bf16.mxu0 %v5646_v4 }
0x102e   : > { %5077 = vmatpush3.bf16.msra.mxu0 %v5835_v22 }
0x102f   : > { %5078 = vmatprep.subr.bf16.mxu0 %v5646_v4 }
0x1032   : > { %5080 = vmatpush3.bf16.msra.mxu0 %v5843_v28 }
0x1033   : > { %5081 = vmatprep.subr.bf16.mxu0 %v5646_v4 }
0x1036   : > { %5083 = vmatpush3.bf16.msra.mxu0 %v5851_v34 }
0x1037   : > { %5084 = vmatprep.subr.bf16.mxu0 %v5646_v4 }
0x103a   : > { %5086 = vmatpush3.bf16.msra.mxu0 %v5859_v38 }
0x103b   : > { %5087 = vmatprep.subr.bf16.mxu0 %v5646_v4 }
0x103e   : > { %5089 = vmatpush3.bf16.msra.mxu0 %v5865_v41 }
0x103f   : > { %5114 = vmatprep.subr.bf16.mxu0 %v5646_v4 }
0x10f4   : > { %v1536_v63 = vpop.f32.mrb[18].mxu0 }
0x10f5   : > { %v1537_v1 = vadd.f32 %v1536_v63, %v5904_v51  ;;  %v4025_v2 = vpop.f32.mrb[19].mxu0 }
0x10f7   : > { %5474 = vtanh.f32 %v1537_v1 }
0x1101   : > { %v5475_v3 = vpop.eup %5474 }
0x1102   : > { %4059 = vmatmul.mubr.f32.vlgmr.msra.gmra.mrb[18].mxu1 %v5475_v3 }
0x1103   : > { %5092 = vmatpush3.bf16.msra.mxu1 %v5824_v13  ;;  %4128 = vmatprep.mubr.msk.f32.mxu1 %vm5647_vm0, %v5648_v7 }
0x1104   : > { %5093 = vmatprep.subr.bf16.mxu1 %v5646_v4 }
0x1107   : > { %5095 = vmatpush3.bf16.msra.mxu1 %v5831_v19 }
0x1108   : > { %5096 = vmatprep.subr.bf16.mxu1 %v5646_v4 }
0x110b   : > { %5098 = vmatpush3.bf16.msra.mxu1 %v5839_v25 }
0x110c   : > { %5099 = vmatprep.subr.bf16.mxu1 %v5646_v4 }
0x110f   : > { %5101 = vmatpush3.bf16.msra.mxu1 %v5847_v31 }
0x1110   : > { %5102 = vmatprep.subr.bf16.mxu1 %v5646_v4 }
0x1113   : > { %5104 = vmatpush3.bf16.msra.mxu1 %v5855_v37 }
0x1114   : > { %5105 = vmatprep.subr.bf16.mxu1 %v5646_v4 }
0x1117   : > { %5107 = vmatpush3.bf16.msra.mxu1 %v5889_v44 }
0x1118   : > { %5108 = vmatprep.subr.bf16.mxu1 %v5646_v4 }
0x111b   : > { %5110 = vmatpush3.bf16.msra.mxu1 %v5893_v47 }
0x111c   : > { %5111 = vmatprep.subr.bf16.mxu1 %v5646_v4 }
0x111f   : > { %5113 = vmatpush3.bf16.msra.mxu1 %v5896_v50 }
0x1120   : > { %5138 = vmatprep.subr.bf16.mxu1 %v5646_v4 }
0x11d5   : > { %v1607_v6 = vpop.f32.mrb[18].mxu1 }
0x11d6   : > { %v1608_v9 = vadd.f32 %v1607_v6, %v5933_v56  ;;  %v4060_v10 = vpop.f32.mrb[19].mxu1 }
0x11d8   : > { %v1611_v11 = vmul.f32 %v1608_v9, %v5935_v58 }
0x11da   : > { %v1612_v12 = vadd.f32 %v1611_v11, %v6237_v0 }
0x11dc   : > { %4094 = vmatmul.mubr.f32.vlgmr.msra.gmra.mrb[20].mxu0 %v1612_v12 }
0x11dd   : > { %5116 = vmatpush3.bf16.msra.mxu0 %v5813_v5  ;;  %4163 = vmatprep.mubr.msk.f32.mxu0 %vm5647_vm0, %v5648_v7 }
0x11de   : > { %5117 = vmatprep.subr.bf16.mxu0 %v5646_v4 }
0x11e1   : > { %5119 = vmatpush3.bf16.msra.mxu0 %v5821_v8 }
0x11e2   : > { %5120 = vmatprep.subr.bf16.mxu0 %v5646_v4 }
0x11e5   : > { %5122 = vmatpush3.bf16.msra.mxu0 %v5827_v16 }
0x11e6   : > { %5123 = vmatprep.subr.bf16.mxu0 %v5646_v4 }
0x11e9   : > { %5125 = vmatpush3.bf16.msra.mxu0 %v5835_v22 }
0x11ea   : > { %5126 = vmatprep.subr.bf16.mxu0 %v5646_v4 }
0x11ed   : > { %5128 = vmatpush3.bf16.msra.mxu0 %v5843_v28 }
0x11ee   : > { %5129 = vmatprep.subr.bf16.mxu0 %v5646_v4 }
0x11f1   : > { %5131 = vmatpush3.bf16.msra.mxu0 %v5851_v34 }
0x11f2   : > { %5132 = vmatprep.subr.bf16.mxu0 %v5646_v4 }
0x11f5   : > { %5134 = vmatpush3.bf16.msra.mxu0 %v5859_v38 }
0x11f6   : > { %5135 = vmatprep.subr.bf16.mxu0 %v5646_v4 }
0x11f9   : > { %5137 = vmatpush3.bf16.msra.mxu0 %v5865_v41 }
0x11fa   : > { %5162 = vmatprep.subr.bf16.mxu0 %v5646_v4 }
0x12af   : > { %v1679_v14 = vpop.f32.mrb[20].mxu0 }
0x12b0   : > { %v1680_v15 = vadd.f32 %v1679_v14, %v5904_v51  ;;  %v4095_v17 = vpop.f32.mrb[21].mxu0  ;;  %v1897_v51 = vmul.f32 2.0, %v1608_v9  ;;  %v2486_v14 = vld [vmem:[#allocation5 + $0x18] sm:$0xff] }
0x12b1   : > { %v2487_v17 = vld [vmem:[#allocation5 + $0x20] sm:$0xff] }
0x12b2   : > { %5476 = vtanh.f32 %v1680_v15  ;;  %v1898_v26 = vadd.f32 %v1897_v51, %v6278_v59  ;;  %v2489_v51 = vld [vmem:[#allocation5 + $0x30] sm:$0xff] }
0x12bc   : > { %v5477_v18 = vpop.eup %5476 }
0x12bd   : > { %4129 = vmatmul.mubr.f32.vlgmr.msra.gmra.mrb[20].mxu1 %v5477_v18 }
0x12be   : > { %5140 = vmatpush3.bf16.msra.mxu1 %v5824_v13  ;;  %4198 = vmatprep.mubr.msk.f32.mxu1 %vm5647_vm0, %v5648_v7 }
0x12bf   : > { %5141 = vmatprep.subr.bf16.mxu1 %v5646_v4 }
0x12c2   : > { %5143 = vmatpush3.bf16.msra.mxu1 %v5831_v19 }
0x12c3   : > { %5144 = vmatprep.subr.bf16.mxu1 %v5646_v4 }
0x12c6   : > { %5146 = vmatpush3.bf16.msra.mxu1 %v5839_v25 }
0x12c7   : > { %5147 = vmatprep.subr.bf16.mxu1 %v5646_v4 }
0x12ca   : > { %5149 = vmatpush3.bf16.msra.mxu1 %v5847_v31 }
0x12cb   : > { %5150 = vmatprep.subr.bf16.mxu1 %v5646_v4 }
0x12ce   : > { %5152 = vmatpush3.bf16.msra.mxu1 %v5855_v37 }
0x12cf   : > { %5153 = vmatprep.subr.bf16.mxu1 %v5646_v4 }
0x12d2   : > { %5155 = vmatpush3.bf16.msra.mxu1 %v5889_v44 }
0x12d3   : > { %5156 = vmatprep.subr.bf16.mxu1 %v5646_v4 }
0x12d6   : > { %5158 = vmatpush3.bf16.msra.mxu1 %v5893_v47 }
0x12d7   : > { %5159 = vmatprep.subr.bf16.mxu1 %v5646_v4 }
0x12da   : > { %5161 = vmatpush3.bf16.msra.mxu1 %v5896_v50 }
0x12db   : > { %5186 = vmatprep.subr.bf16.mxu1 %v5646_v4 }
0x1390   : > { %v1750_v20 = vpop.f32.mrb[20].mxu1 }
0x1391   : > { %v1751_v21 = vadd.f32 %v1750_v20, %v5933_v56  ;;  %v4130_v24 = vpop.f32.mrb[21].mxu1  ;;  %v2490_v20 = vld [vmem:[#allocation5 + $0x38] sm:$0xff] }
0x1392   : > { %v2491_v24 = vld [vmem:[#allocation5 + $0x40] sm:$0xff] }
0x1393   : > { %v1754_v27 = vmul.f32 %v1751_v21, %v6021_v23  ;;  %v1899_v29 = vmul.f32 2.0, %v1751_v21  ;;  %v5364_v21 = vpack.c.bf16 %v2490_v20, %v2489_v51  ;;  %v2663_v20 = vld [vmem:[#allocation11 + $0x18] sm:$0xff] (%p124_p3) }
0x1395   : > { %v1755_v30 = vadd.f32 %v1754_v27, %v6237_v0  ;;  %v1900_v32 = vadd.f32 %v1899_v29, %v1898_v26  ;;  %v2492_v26 = vld [vmem:[#allocation5 + $0x48] sm:$0xff]  ;;  %v2493_v29 = vld [vmem:[#allocation5 + $0x50] sm:$0xff] }
0x1396   : > { %v5367_v27 = vpack.c.bf16 %v2492_v26, %v2491_v24  ;;  %v2664_v26 = vld [vmem:[#allocation11 + $0x20] sm:$0xff] (%p124_p3) }
0x1397   : > { %4164 = vmatmul.mubr.f32.vlgmr.msra.gmra.mrb[22].mxu0 %v1755_v30  ;;  %v2494_v30 = vld [vmem:[#allocation5 + $0x58] sm:$0xff] }
0x1398   : > { %5164 = vmatpush3.bf16.msra.mxu0 %v5813_v5  ;;  %4233 = vmatprep.mubr.msk.f32.mxu0 %vm5647_vm0, %v5648_v7 }
0x1399   : > { %5165 = vmatprep.subr.bf16.mxu0 %v5646_v4 }
0x139c   : > { %5167 = vmatpush3.bf16.msra.mxu0 %v5821_v8 }
0x139d   : > { %5168 = vmatprep.subr.bf16.mxu0 %v5646_v4 }
0x13a0   : > { %5170 = vmatpush3.bf16.msra.mxu0 %v5827_v16 }
0x13a1   : > { %5171 = vmatprep.subr.bf16.mxu0 %v5646_v4 }
0x13a4   : > { %5173 = vmatpush3.bf16.msra.mxu0 %v5835_v22 }
0x13a5   : > { %5174 = vmatprep.subr.bf16.mxu0 %v5646_v4 }
0x13a8   : > { %5176 = vmatpush3.bf16.msra.mxu0 %v5843_v28 }
0x13a9   : > { %5177 = vmatprep.subr.bf16.mxu0 %v5646_v4 }
0x13ac   : > { %5179 = vmatpush3.bf16.msra.mxu0 %v5851_v34 }
0x13ad   : > { %5180 = vmatprep.subr.bf16.mxu0 %v5646_v4 }
0x13b0   : > { %5182 = vmatpush3.bf16.msra.mxu0 %v5859_v38 }
0x13b1   : > { %5183 = vmatprep.subr.bf16.mxu0 %v5646_v4 }
0x13b4   : > { %5185 = vmatpush3.bf16.msra.mxu0 %v5865_v41 }
0x13b5   : > { %5210 = vmatprep.subr.bf16.mxu0 %v5646_v4 }
0x146a   : > { %v1822_v56 = vpop.f32.mrb[22].mxu0 }
0x146b   : > { %v1823_v35 = vadd.f32 %v6385_v33, %v1822_v56  ;;  %v4165_v36 = vpop.f32.mrb[23].mxu0  ;;  %v2495_v56 = vld [vmem:[#allocation5 + $0x60] sm:$0xff] }
0x146d   : > { %5478 = vtanh.f32 %v1823_v35  ;;  %v2496_v35 = vld [vmem:[#allocation5 + $0x68] sm:$0xff] }
0x146e   : > { %v5373_v36 = vpack.c.bf16 %v2496_v35, %v2495_v56  ;;  %v2668_v35 = vld [vmem:[#allocation11 + $0x40] sm:$0xff] (%p124_p3) }
0x1477   : > { %v5479_v39 = vpop.eup %5478 }
0x1478   : > { %4199 = vmatmul.mubr.f32.vlgmr.msra.gmra.mrb[22].mxu1 %v5479_v39 }
0x1479   : > { %5188 = vmatpush3.bf16.msra.mxu1 %v5824_v13  ;;  %4268 = vmatprep.mubr.msk.f32.mxu1 %vm5647_vm0, %v5648_v7 }
0x147a   : > { %5189 = vmatprep.subr.bf16.mxu1 %v5646_v4 }
0x147d   : > { %5191 = vmatpush3.bf16.msra.mxu1 %v5831_v19 }
0x147e   : > { %5192 = vmatprep.subr.bf16.mxu1 %v5646_v4 }
0x1481   : > { %5194 = vmatpush3.bf16.msra.mxu1 %v5839_v25 }
0x1482   : > { %5195 = vmatprep.subr.bf16.mxu1 %v5646_v4 }
0x1485   : > { %5197 = vmatpush3.bf16.msra.mxu1 %v5847_v31 }
0x1486   : > { %5198 = vmatprep.subr.bf16.mxu1 %v5646_v4 }
0x1489   : > { %5200 = vmatpush3.bf16.msra.mxu1 %v5855_v37 }
0x148a   : > { %5201 = vmatprep.subr.bf16.mxu1 %v5646_v4 }
0x148d   : > { %5203 = vmatpush3.bf16.msra.mxu1 %v5889_v44 }
0x148e   : > { %5204 = vmatprep.subr.bf16.mxu1 %v5646_v4 }
0x1491   : > { %5206 = vmatpush3.bf16.msra.mxu1 %v5893_v47 }
0x1492   : > { %5207 = vmatprep.subr.bf16.mxu1 %v5646_v4 }
0x1495   : > { %5209 = vmatpush3.bf16.msra.mxu1 %v5896_v50 }
0x1496   : > { %5234 = vmatprep.subr.bf16.mxu1 %v5646_v4 }
0x154b   : > { %v1893_v40 = vpop.f32.mrb[22].mxu1 }
0x154c   : > { %v1894_v43 = vadd.f32 %v6409_v42, %v1893_v40  ;;  %v4200_v45 = vpop.f32.mrb[23].mxu1 }
0x154d   : > { %v2570_v45 = vld [vmem:[#allocation6] sm:$0xff] }
0x154e   : > { %v1901_v48 = vadd.f32 %v1900_v32, %v1894_v43  ;;  %v5370_v32 = vpack.c.bf16 %v2494_v30, %v2493_v29  ;;  %v2666_v30 = vld [vmem:[#allocation11 + $0x30] sm:$0xff] (%p124_p3) }
0x1550   : > { %v1902_v49 = vmul.f32 %v1901_v48, %v6066_v46  ;;  %v2571_v48 = vld [vmem:[#allocation6 + $0x8] sm:$0xff] }
0x1552   : > { %v6414_v52 = vadd.f32 %v1902_v49, %v6237_v0  ;;  %v5379_v49 = vpack.c.bf16 %v2571_v48, %v2570_v45  ;;  %v2672_v48 = vld [vmem:[#allocation11 + $0x60] sm:$0xff] (%p124_p3) }
0x1554   : > { %4234 = vmatmul.mubr.f32.vlgmr.msra.gmra.mrb[24].mxu0 %v6414_v52 }
0x1555   : > { %5212 = vmatpush3.bf16.msra.mxu0 %v5813_v5  ;;  %4303 = vmatprep.mubr.msk.f32.mxu0 %vm5647_vm0, %v5648_v7 }
0x1556   : > { %5213 = vmatprep.subr.bf16.mxu0 %v5646_v4 }
0x1559   : > { %5215 = vmatpush3.bf16.msra.mxu0 %v5821_v8 }
0x155a   : > { %5216 = vmatprep.subr.bf16.mxu0 %v5646_v4 }
0x155d   : > { %5218 = vmatpush3.bf16.msra.mxu0 %v5827_v16 }
0x155e   : > { %5219 = vmatprep.subr.bf16.mxu0 %v5646_v4 }
0x1561   : > { %5221 = vmatpush3.bf16.msra.mxu0 %v5835_v22 }
0x1562   : > { %5222 = vmatprep.subr.bf16.mxu0 %v5646_v4 }
0x1565   : > { %5224 = vmatpush3.bf16.msra.mxu0 %v5843_v28 }
0x1566   : > { %5225 = vmatprep.subr.bf16.mxu0 %v5646_v4 }
0x1569   : > { %5227 = vmatpush3.bf16.msra.mxu0 %v5851_v34 }
0x156a   : > { %5228 = vmatprep.subr.bf16.mxu0 %v5646_v4 }
0x156d   : > { %5230 = vmatpush3.bf16.msra.mxu0 %v5859_v38 }
0x156e   : > { %5231 = vmatprep.subr.bf16.mxu0 %v5646_v4 }
0x1571   : > { %5233 = vmatpush3.bf16.msra.mxu0 %v5865_v41 }
0x1572   : > { %5258 = vmatprep.subr.bf16.mxu0 %v5646_v4 }
0x1627   : > { %v1970_v0 = vpop.f32.mrb[24].mxu0 }
0x1628   : > { %v1971_v53 = vadd.f32 %v6385_v33, %v1970_v0  ;;  %v4235_v54 = vpop.f32.mrb[25].mxu0  ;;  %v2572_v0 = vld [vmem:[#allocation6 + $0x10] sm:$0xff] }
0x162a   : > { %5480 = vtanh.f32 %v1971_v53  ;;  %v2573_v53 = vld [vmem:[#allocation6 + $0x18] sm:$0xff] }
0x1634   : > { %v5481_v55 = vpop.eup %5480 }
0x1635   : > { %4269 = vmatmul.mubr.f32.vlgmr.msra.gmra.mrb[24].mxu1 %v5481_v55  ;;  %v5382_v55 = vpack.c.bf16 %v2573_v53, %v2572_v0  ;;  %v2674_v53 = vld [vmem:[#allocation11 + $0x70] sm:$0xff] (%p124_p3) }
0x1636   : > { %5236 = vmatpush3.bf16.msra.mxu1 %v5824_v13  ;;  %4338 = vmatprep.mubr.msk.f32.mxu1 %vm5647_vm0, %v5648_v7 }
0x1637   : > { %5237 = vmatprep.subr.bf16.mxu1 %v5646_v4 }
0x163a   : > { %5239 = vmatpush3.bf16.msra.mxu1 %v5831_v19 }
0x163b   : > { %5240 = vmatprep.subr.bf16.mxu1 %v5646_v4 }
0x163e   : > { %5242 = vmatpush3.bf16.msra.mxu1 %v5839_v25 }
0x163f   : > { %5243 = vmatprep.subr.bf16.mxu1 %v5646_v4 }
0x1642   : > { %5245 = vmatpush3.bf16.msra.mxu1 %v5847_v31 }
0x1643   : > { %5246 = vmatprep.subr.bf16.mxu1 %v5646_v4 }
0x1646   : > { %5248 = vmatpush3.bf16.msra.mxu1 %v5855_v37 }
0x1647   : > { %5249 = vmatprep.subr.bf16.mxu1 %v5646_v4 }
0x164a   : > { %5251 = vmatpush3.bf16.msra.mxu1 %v5889_v44 }
0x164b   : > { %5252 = vmatprep.subr.bf16.mxu1 %v5646_v4 }
0x164e   : > { %5254 = vmatpush3.bf16.msra.mxu1 %v5893_v47 }
0x164f   : > { %5255 = vmatprep.subr.bf16.mxu1 %v5646_v4 }
0x1652   : > { %5257 = vmatpush3.bf16.msra.mxu1 %v5896_v50 }
0x1653   : > { %5282 = vmatprep.subr.bf16.mxu1 %v5646_v4 }
0x1708   : > { %v2041_v57 = vpop.f32.mrb[24].mxu1 }
0x1709   : > { %v6455_v59 = vadd.f32 %v6409_v42, %v2041_v57  ;;  %v4270_v60 = vpop.f32.mrb[25].mxu1  ;;  %v2574_v57 = vld [vmem:[#allocation6 + $0x20] sm:$0xff] }
0x170a   : > { %v2576_v60 = vld [vmem:[#allocation6 + $0x30] sm:$0xff] }
0x170b   : > { %v2045_v61 = vmul.f32 %v6455_v59, %v5935_v58 }
0x170d   : > { %v2046_v62 = vadd.f32 %v2045_v61, %v6414_v52  ;;  %v2577_v61 = vld [vmem:[#allocation6 + $0x38] sm:$0xff] }
0x170f   : > { %4304 = vmatmul.mubr.f32.vlgmr.msra.gmra.mrb[26].mxu0 %v2046_v62  ;;  %v5388_v62 = vpack.c.bf16 %v2577_v61, %v2576_v60 }
0x1710   : > { %5260 = vmatpush3.bf16.msra.mxu0 %v5813_v5  ;;  %4373 = vmatprep.mubr.msk.f32.mxu0 %vm5647_vm0, %v5648_v7 }
0x1711   : > { %5261 = vmatprep.subr.bf16.mxu0 %v5646_v4 }
0x1714   : > { %5263 = vmatpush3.bf16.msra.mxu0 %v5821_v8 }
0x1715   : > { %5264 = vmatprep.subr.bf16.mxu0 %v5646_v4 }
0x1718   : > { %5266 = vmatpush3.bf16.msra.mxu0 %v5827_v16 }
0x1719   : > { %5267 = vmatprep.subr.bf16.mxu0 %v5646_v4 }
0x171c   : > { %5269 = vmatpush3.bf16.msra.mxu0 %v5835_v22 }
0x171d   : > { %5270 = vmatprep.subr.bf16.mxu0 %v5646_v4 }
0x1720   : > { %5272 = vmatpush3.bf16.msra.mxu0 %v5843_v28 }
0x1721   : > { %5273 = vmatprep.subr.bf16.mxu0 %v5646_v4 }
0x1724   : > { %5275 = vmatpush3.bf16.msra.mxu0 %v5851_v34 }
0x1725   : > { %5276 = vmatprep.subr.bf16.mxu0 %v5646_v4 }
0x1728   : > { %5278 = vmatpush3.bf16.msra.mxu0 %v5859_v38 }
0x1729   : > { %5279 = vmatprep.subr.bf16.mxu0 %v5646_v4 }
0x172c   : > { %5281 = vmatpush3.bf16.msra.mxu0 %v5865_v41 }
0x172d   : > { %5306 = vmatprep.subr.bf16.mxu0 %v5646_v4 }
0x17e2   : > { %v2113_v63 = vpop.f32.mrb[26].mxu0 }
0x17e3   : > { %v2114_v1 = vadd.f32 %v6385_v33, %v2113_v63  ;;  %v4305_v2 = vpop.f32.mrb[27].mxu0  ;;  %v2578_v63 = vld [vmem:[#allocation6 + $0x40] sm:$0xff] }
0x17e5   : > { %5482 = vtanh.f32 %v2114_v1  ;;  %v2579_v1 = vld [vmem:[#allocation6 + $0x48] sm:$0xff] }
0x17e6   : > { %v5391_v2 = vpack.c.bf16 %v2579_v1, %v2578_v63 }
0x17ef   : > { %v5483_v3 = vpop.eup %5482 }
0x17f0   : > { %4339 = vmatmul.mubr.f32.vlgmr.msra.gmra.mrb[26].mxu1 %v5483_v3  ;;  %v2581_v3 = vld [vmem:[#allocation6 + $0x58] sm:$0xff] }
0x17f1   : > { %5284 = vmatpush3.bf16.msra.mxu1 %v5824_v13  ;;  %4408 = vmatprep.mubr.msk.f32.mxu1 %vm5647_vm0, %v5648_v7 }
0x17f2   : > { %5285 = vmatprep.subr.bf16.mxu1 %v5646_v4 }
0x17f5   : > { %5287 = vmatpush3.bf16.msra.mxu1 %v5831_v19 }
0x17f6   : > { %5288 = vmatprep.subr.bf16.mxu1 %v5646_v4 }
0x17f9   : > { %5290 = vmatpush3.bf16.msra.mxu1 %v5839_v25 }
0x17fa   : > { %5291 = vmatprep.subr.bf16.mxu1 %v5646_v4 }
0x17fd   : > { %5293 = vmatpush3.bf16.msra.mxu1 %v5847_v31 }
0x17fe   : > { %5294 = vmatprep.subr.bf16.mxu1 %v5646_v4 }
0x1801   : > { %5296 = vmatpush3.bf16.msra.mxu1 %v5855_v37 }
0x1802   : > { %5297 = vmatprep.subr.bf16.mxu1 %v5646_v4 }
0x1805   : > { %5299 = vmatpush3.bf16.msra.mxu1 %v5889_v44 }
0x1806   : > { %5300 = vmatprep.subr.bf16.mxu1 %v5646_v4 }
0x1809   : > { %5302 = vmatpush3.bf16.msra.mxu1 %v5893_v47 }
0x180a   : > { %5303 = vmatprep.subr.bf16.mxu1 %v5646_v4 }
0x180d   : > { %5305 = vmatpush3.bf16.msra.mxu1 %v5896_v50 }
0x180e   : > { %5330 = vmatprep.subr.bf16.mxu1 %v5646_v4 }
0x18c3   : > { %v2184_v6 = vpop.f32.mrb[26].mxu1 }
0x18c4   : > { %v2185_v9 = vadd.f32 %v6409_v42, %v2184_v6  ;;  %v4340_v10 = vpop.f32.mrb[27].mxu1 }
0x18c5   : > { %v2583_v10 = vld [vmem:[#allocation6 + $0x68] sm:$0xff] }
0x18c6   : > { %v2188_v11 = vmul.f32 %v2185_v9, %v5935_v58  ;;  %v2485_v58 = vld [vmem:[#allocation5 + $0x10] sm:$0xff] }
0x18c7   : > { %v5358_v15 = vpack.c.bf16 %v2486_v14, %v2485_v58 }
0x18c8   : > { %v2189_v12 = vadd.f32 %v2188_v11, %v6414_v52 }
0x18ca   : > { %4374 = vmatmul.mubr.f32.vlgmr.msra.gmra.mrb[28].mxu0 %v2189_v12  ;;  %v2497_v12 = vld [vmem:[#allocation5 + $0x70] sm:$0xff] }
0x18cb   : > { %5308 = vmatpush3.bf16.msra.mxu0 %v5813_v5  ;;  %4443 = vmatprep.mubr.msk.f32.mxu0 %vm5647_vm0, %v5648_v7 }
0x18cc   : > { %5309 = vmatprep.subr.bf16.mxu0 %v5646_v4 }
0x18cf   : > { %5311 = vmatpush3.bf16.msra.mxu0 %v5821_v8 }
0x18d0   : > { %5312 = vmatprep.subr.bf16.mxu0 %v5646_v4 }
0x18d3   : > { %5314 = vmatpush3.bf16.msra.mxu0 %v5827_v16 }
0x18d4   : > { %5315 = vmatprep.subr.bf16.mxu0 %v5646_v4 }
0x18d7   : > { %5317 = vmatpush3.bf16.msra.mxu0 %v5835_v22 }
0x18d8   : > { %5318 = vmatprep.subr.bf16.mxu0 %v5646_v4 }
0x18db   : > { %5320 = vmatpush3.bf16.msra.mxu0 %v5843_v28 }
0x18dc   : > { %5321 = vmatprep.subr.bf16.mxu0 %v5646_v4 }
0x18df   : > { %5323 = vmatpush3.bf16.msra.mxu0 %v5851_v34 }
0x18e0   : > { %5324 = vmatprep.subr.bf16.mxu0 %v5646_v4 }
0x18e3   : > { %5326 = vmatpush3.bf16.msra.mxu0 %v5859_v38 }
0x18e4   : > { %5327 = vmatprep.subr.bf16.mxu0 %v5646_v4 }
0x18e7   : > { %5329 = vmatpush3.bf16.msra.mxu0 %v5865_v41 }
0x18e8   : > { %5354 = vmatprep.subr.bf16.mxu0 %v5646_v4 }
0x199d   : > { %v2256_v5 = vpop.f32.mrb[28].mxu0 }
0x199e   : > { %v2257_v8 = vadd.f32 %v6385_v33, %v2256_v5  ;;  %v4375_v16 = vpop.f32.mrb[29].mxu0  ;;  %v2498_v5 = vld [vmem:[#allocation5 + $0x78] sm:$0xff] }
0x199f   : > { %v2584_v16 = vld [vmem:[#allocation6 + $0x70] sm:$0xff] }
0x19a0   : > { %5484 = vtanh.f32 %v2257_v8  ;;  %v5376_v8 = vpack.c.bf16 %v2498_v5, %v2497_v12 }
0x19aa   : > { %v5485_v22 = vpop.eup %5484 }
0x19ab   : > { %4409 = vmatmul.mubr.f32.vlgmr.msra.gmra.mrb[28].mxu1 %v5485_v22  ;;  %v2585_v22 = vld [vmem:[#allocation6 + $0x78] sm:$0xff] }
0x19ac   : > { %5332 = vmatpush3.bf16.msra.mxu1 %v5824_v13  ;;  %4478 = vmatprep.mubr.msk.f32.mxu1 %vm5647_vm0, %v5648_v7  ;;  %v2474_v13 = vmul.f32 2.0, %v2185_v9  ;;  %v2582_v9 = vld [vmem:[#allocation6 + $0x60] sm:$0xff] }
0x19ad   : > { %5333 = vmatprep.subr.bf16.mxu1 %v5646_v4  ;;  %v5397_v11 = vpack.c.bf16 %v2583_v10, %v2582_v9 }
0x19b0   : > { %5335 = vmatpush3.bf16.msra.mxu1 %v5831_v19 }
0x19b1   : > { %5336 = vmatprep.subr.bf16.mxu1 %v5646_v4 }
0x19b4   : > { %5338 = vmatpush3.bf16.msra.mxu1 %v5839_v25 }
0x19b5   : > { %5339 = vmatprep.subr.bf16.mxu1 %v5646_v4 }
0x19b8   : > { %5341 = vmatpush3.bf16.msra.mxu1 %v5847_v31  ;;  %v2475_v31 = vadd.f32 %v2474_v13, %v6455_v59  ;;  %v2575_v59 = vld [vmem:[#allocation6 + $0x28] sm:$0xff]  ;;  %v5400_v13 = vpack.c.bf16 %v2585_v22, %v2584_v16 }
0x19b9   : > { %5342 = vmatprep.subr.bf16.mxu1 %v5646_v4 }
0x19bc   : > { %5344 = vmatpush3.bf16.msra.mxu1 %v5855_v37 }
0x19bd   : > { %5345 = vmatprep.subr.bf16.mxu1 %v5646_v4 }
0x19c0   : > { %5347 = vmatpush3.bf16.msra.mxu1 %v5889_v44  ;;  %v2483_v44 = vld [vmem:[#allocation5] sm:$0xff] }
0x19c1   : > { %5348 = vmatprep.subr.bf16.mxu1 %v5646_v4 }
0x19c4   : > { %5350 = vmatpush3.bf16.msra.mxu1 %v5893_v47  ;;  %v2484_v47 = vld [vmem:[#allocation5 + $0x8] sm:$0xff] }
0x19c5   : > { %5351 = vmatprep.subr.bf16.mxu1 %v5646_v4 }
0x19c8   : > { %5353 = vmatpush3.bf16.msra.mxu1 %v5896_v50  ;;  %v5355_v50 = vpack.c.bf16 %v2484_v47, %v2483_v44  ;;  %v2499_v47 = vld [vmem:[%s6590_s3] sm:$0x1] }
0x19c9   : > { %5378 = vmatprep.subr.bf16.mxu1 %v5646_v4 }
0x1a7e   : > { %v2327_v19 = vpop.f32.mrb[28].mxu1 }
0x1a7f   : > { %v2328_v25 = vadd.f32 %v6409_v42, %v2327_v19  ;;  %v4410_v28 = vpop.f32.mrb[29].mxu1  ;;  %v2482_v19 = vld [vmem:[%s2481_s28] sm:$0x1] }
0x1a81   : > { %v2331_v34 = vmul.f32 %v2328_v25, %v6021_v23  ;;  %v2476_v37 = vmul.f32 2.0, %v2328_v25  ;;  %v2488_v23 = vld [vmem:[#allocation5 + $0x28] sm:$0xff] }
0x1a82   : > { %v5361_v18 = vpack.c.bf16 %v2488_v23, %v2487_v17  ;;  %v2661_v17 = vld [vmem:[#allocation11 + $0x8] sm:$0xff] (%p124_p3)  ;;  %v2662_v23 = vld [vmem:[#allocation11 + $0x10] sm:$0xff] (%p124_p3) }
0x1a83   : > { %v2332_v38 = vadd.f32 %v2331_v34, %v6414_v52  ;;  %v6541_v41 = vadd.f32 %v2476_v37, %v2475_v31  ;;  %v5406_v24 = vpack.c.bf16 (%p124_p3), %v2663_v20, %v2662_v23 }
0x1a85   : > { %4444 = vmatmul.mubr.f32.vlgmr.msra.gmra.mrb[30].mxu0 %v2332_v38 }
0x1a86   : > { %4513 = vmatprep.mubr.msk.f32.mxu0 %vm5647_vm0, %v5648_v7  ;;  %5356 = vmatpush3.bf16.msra.mxu0 %v5355_v50 }
0x1a87   : > { %5357 = vmatprep.subr.bf16.mxu0 %v5646_v4 }
0x1a8a   : > { %5359 = vmatpush3.bf16.msra.mxu0 %v5358_v15 }
0x1a8b   : > { %5360 = vmatprep.subr.bf16.mxu0 %v5646_v4 }
0x1a8e   : > { %5362 = vmatpush3.bf16.msra.mxu0 %v5361_v18  ;;  %v5649_v18 = vmov (%p124_p3), 0.0|0.0  }
0x1a8f   : > { %5363 = vmatprep.subr.bf16.mxu0 %v5646_v4 }
0x1a92   : > { %5365 = vmatpush3.bf16.msra.mxu0 %v5364_v21  ;;  %v5651_v21 = vmov (%p124_p3), 0.0  }
0x1a93   : > { %5366 = vmatprep.subr.bf16.mxu0 %v5646_v4 }
0x1a96   : > { %5368 = vmatpush3.bf16.msra.mxu0 %v5367_v27  ;;  %v2665_v27 = vld [vmem:[#allocation11 + $0x28] sm:$0xff] (%p124_p3) }
0x1a97   : > { %5369 = vmatprep.subr.bf16.mxu0 %v5646_v4  ;;  %v5409_v29 = vpack.c.bf16 (%p124_p3), %v2665_v27, %v2664_v26 }
0x1a9a   : > { %5371 = vmatpush3.bf16.msra.mxu0 %v5370_v32  ;;  %v2667_v32 = vld [vmem:[#allocation11 + $0x38] sm:$0xff] (%p124_p3) }
0x1a9b   : > { %5372 = vmatprep.subr.bf16.mxu0 %v5646_v4  ;;  %v5412_v56 = vpack.c.bf16 (%p124_p3), %v2667_v32, %v2666_v30 }
0x1a9e   : > { %5374 = vmatpush3.bf16.msra.mxu0 %v5373_v36  ;;  %v2669_v36 = vld [vmem:[#allocation11 + $0x48] sm:$0xff] (%p124_p3) }
0x1a9f   : > { %5375 = vmatprep.subr.bf16.mxu0 %v5646_v4 }
0x1aa2   : > { %5377 = vmatpush3.bf16.msra.mxu0 %v5376_v8 }
0x1aa3   :  { %5402 = vmatprep.subr.bf16.mxu0 (%p124_p3), %v5649_v18 }
0x1aa5   : > { %4514 = vmatmul.mubr.f32.vlgmr.msra.gmra.mrb[32].mxu0 %v2482_v19 }
0x1aa6   :  { %4583 = vmatprep.mubr.msk.f32.mxu0 (%p124_p3), %vm5650_vm1, %v5651_v21 }
0x1b58   : > { %v2399_v39 = vpop.f32.mrb[30].mxu0 }
0x1b59   : > { %v2400_v40 = vadd.f32 %v6385_v33, %v2399_v39  ;;  %v4445_v43 = vpop.f32.mrb[31].mxu0  ;;  %v5385_v33 = vpack.c.bf16 %v2575_v59, %v2574_v57  ;;  %v5415_v39 = vpack.c.bf16 (%p124_p3), %v2669_v36, %v2668_v35  ;;  %v2676_v57 = vld [vmem:[%s6598_s11] sm:$0x1] (%p124_p3) }
0x1b5a   :  { %v2671_v43 = vld [vmem:[#allocation11 + $0x58] sm:$0xff] (%p124_p3) }
0x1b5b   : > { %5486 = vtanh.f32 %v2400_v40  ;;  %v2670_v40 = vld [vmem:[#allocation11 + $0x50] sm:$0xff] (%p124_p3) }
0x1b5c   :  { %v5418_v45 = vpack.c.bf16 (%p124_p3), %v2671_v43, %v2670_v40 }
0x1b65   : > { %v5487_v54 = vpop.eup %5486 }
0x1b66   : > { %4479 = vmatmul.mubr.f32.vlgmr.msra.gmra.mrb[30].mxu1 %v5487_v54  ;;  %v2675_v54 = vld [vmem:[#allocation11 + $0x78] sm:$0xff] (%p124_p3) }
0x1b67   : > { %5380 = vmatpush3.bf16.msra.mxu1 %v5379_v49  ;;  %4548 = vmatprep.mubr.msk.f32.mxu1 %vm5647_vm0, %v5648_v7  ;;  %v2580_v7 = vld [vmem:[#allocation6 + $0x50] sm:$0xff]  ;;  %v2673_v49 = vld [vmem:[#allocation11 + $0x68] sm:$0xff] (%p124_p3) }
0x1b68   : > { %5381 = vmatprep.subr.bf16.mxu1 %v5646_v4  ;;  %v5394_v6 = vpack.c.bf16 %v2581_v3, %v2580_v7 }
0x1b6b   : > { %5383 = vmatpush3.bf16.msra.mxu1 %v5382_v55  ;;  %v5424_v55 = vpack.c.bf16 (%p124_p3), %v2675_v54, %v2674_v53 }
0x1b6c   : > { %5384 = vmatprep.subr.bf16.mxu1 %v5646_v4 }
0x1b6f   : > { %5386 = vmatpush3.bf16.msra.mxu1 %v5385_v33 }
0x1b70   : > { %5387 = vmatprep.subr.bf16.mxu1 %v5646_v4 }
0x1b73   : > { %5389 = vmatpush3.bf16.msra.mxu1 %v5388_v62 }
0x1b74   : > { %5390 = vmatprep.subr.bf16.mxu1 %v5646_v4 }
0x1b77   : > { %5392 = vmatpush3.bf16.msra.mxu1 %v5391_v2 }
0x1b78   : > { %5393 = vmatprep.subr.bf16.mxu1 %v5646_v4  ;;  %v2566_v38 = vpop.f32.mrb[32].mxu0 }
0x1b79   : > { %v4515_v44 = vpop.f32.mrb[33].mxu0  ;;  %v2567_v50 = vadd.f32 %v2566_v38, %v2499_v47 }
0x1b7b   : > { %5395 = vmatpush3.bf16.msra.mxu1 %v5394_v6 }
0x1b7c   : > { %5396 = vmatprep.subr.bf16.mxu1 %v5646_v4 }
0x1b7f   : > { %5398 = vmatpush3.bf16.msra.mxu1 %v5397_v11 }
0x1b80   : > { %5399 = vmatprep.subr.bf16.mxu1 %v5646_v4 }
0x1b83   : > { %5401 = vmatpush3.bf16.msra.mxu1 %v5400_v13 }
0x1c39   : > { %v2470_v25 = vpop.f32.mrb[30].mxu1 }
0x1c3a   : > { %v2471_v28 = vadd.f32 %v6409_v42, %v2470_v25  ;;  %v4480_v31 = vpop.f32.mrb[31].mxu1  ;;  %v2657_v42 = vld [vmem:[%s6592_s5] sm:$0x1] }
0x1c3c   : > { %v2478_v34 = vadd.f32 %v6541_v41, %v2471_v28 }
0x1c3e   : > { %v2479_v37 = vmul.f32 %v2478_v34, %v6066_v46 }
0x1c40   : > { %v2480_v4 = vadd.f32 %v2479_v37, %v6414_v52  ;;  %v2660_v52 = vld [vmem:[#allocation11] sm:$0xff] (%p124_p3) }
0x1c41   :  { %v5403_v51 = vpack.c.bf16 (%p124_p3), %v2661_v17, %v2660_v52 }
0x1c42   : > { %4549 = vmatmul.mubr.f32.vlgmr.msra.gmra.mrb[32].mxu1 %v2480_v4 }
0x1c43   :  { %5404 = vmatpush3.bf16.msra.mxu0 (%p124_p3), %v5403_v51 }
0x1c44   :  { %5405 = vmatprep.subr.bf16.mxu0 (%p124_p3), %v5649_v18 }
0x1c47   :  { %5407 = vmatpush3.bf16.msra.mxu0 (%p124_p3), %v5406_v24 }
0x1c48   :  { %5408 = vmatprep.subr.bf16.mxu0 (%p124_p3), %v5649_v18 }
0x1c4b   :  { %5410 = vmatpush3.bf16.msra.mxu0 (%p124_p3), %v5409_v29 }
0x1c4c   :  { %5411 = vmatprep.subr.bf16.mxu0 (%p124_p3), %v5649_v18 }
0x1c4f   :  { %5413 = vmatpush3.bf16.msra.mxu0 (%p124_p3), %v5412_v56 }
0x1c50   :  { %5414 = vmatprep.subr.bf16.mxu0 (%p124_p3), %v5649_v18 }
0x1c53   :  { %5416 = vmatpush3.bf16.msra.mxu0 (%p124_p3), %v5415_v39 }
0x1c54   :  { %5417 = vmatprep.subr.bf16.mxu0 (%p124_p3), %v5649_v18 }
0x1c57   :  { %5419 = vmatpush3.bf16.msra.mxu0 (%p124_p3), %v5418_v45 }
0x1c58   :  { %5420 = vmatprep.subr.bf16.mxu0 (%p124_p3), %v5649_v18 }
0x1d15   : > { %v2652_v58 = vpop.f32.mrb[32].mxu1 }
0x1d16   : > { %v2656_v14 = vadd.f32 %v2652_v58, %v2567_v50  ;;  %v4550_v15 = vpop.f32.mrb[33].mxu1 }
0x1d18   : > { %v2658_v41 = vadd.f32 %v2657_v42, %v2656_v14 }
0x1d1a   : > { %5488 = vtanh.f32 %v2658_v41 }
0x1d1f   :  { %126 = sbr.rel (!%p124_p3) target bundleno = 104 (0x68), region = 100 }
0x1d24   : > { %v5489_v46 = vpop.eup %5488  }
0x1d25   : > { %v6600_v0 = vmov %v5489_v46 }
0x1d26   :  { %v5421_v0 = vpack.c.bf16 %v2673_v49, %v2672_v48 }
0x1d28   :  { %5422 = vmatpush3.bf16.msra.mxu0 %v5421_v0 }
0x1d29   :  { %5423 = vmatprep.subr.bf16.mxu0 %v5649_v18 }
0x1d2c   :  { %5425 = vmatpush3.bf16.msra.mxu0 %v5424_v55 }
0x1d2f   :  { %4584 = vmatmul.mubr.f32.vlgmr.msra.gmra.mrb[0].mxu0 %v5489_v46 }
0x1e02   :  { %v2743_v59 = vpop.f32.mrb[0].mxu0 }
0x1e03   :  { %v2744_v33 = vadd.f32 %v2743_v59, %v2676_v57  ;;  %v4585_v60 = vpop.f32.mrb[1].mxu0 }
0x1e05   :  { %2747 = vst [vmem:[%s6599_s12] sm:$0x1] %v2744_v33 }
0x1e06   :  { %2752 = vsyncpa [#allocation3], 1 }
0x1e07   :  { %2753 = vsyncpa [#allocation7], 1 }
0x1e08   :  { %2754 = vsyncpa [#allocation10], 1 }
0x1e09   :  { %2755 = vsyncpa [#allocation4], 1 }

</bundles_post_ra>
